<compile_context>
chip_gen: v6e
topology: v6e:2x2x1
jax: 0.10.0
libtpu: 0.0.40
codegen_flags: <defaults>
</compile_context>

<pallas_src>
import functools
import math

import jax
import jax.numpy as jnp
from jax.experimental import pallas as pl
from jax.experimental.pallas import tpu as pltpu

_HIGHEST = jax.lax.Precision.HIGHEST  # reference only
_LN_EPS = 1e-5


def _layernorm(x, gamma, beta):
    mean = jnp.mean(x, axis=-1, keepdims=True)
    var = jnp.mean(jnp.square(x - mean), axis=-1, keepdims=True)
    inv = jax.lax.rsqrt(var + _LN_EPS)
    return (x - mean) * inv * gamma + beta


def _gelu_exact(x):
    # nn.GELU() default (erf form)
    return 0.5 * x * (1.0 + jax.lax.erf(x * (1.0 / math.sqrt(2.0))))


def _encoder_block_kernel(
    x_ref,
    wqkv_ref, bqkv_ref,
    wo_ref, bo_ref,
    g1_ref, be1_ref,
    w1_ref, b1_ref, w2_ref, b2_ref,
    g2_ref, be2_ref,
    o_ref,
    q_sc, k_sc, v_sc, ctx_sc,
    *, num_heads, seq_len,
):
    f32, bf16 = jnp.float32, jnp.bfloat16
    n_tok, d_model = x_ref.shape            # (bt*S, D)
    seq = seq_len
    bt = n_tok // seq
    dk = d_model // num_heads
    scale = 1.0 / math.sqrt(dk)

    x2 = x_ref[...].astype(f32)              # residual path (f32)
    x2_lp = x2.astype(bf16)                  # bf16 MXU operand

    # ---- fused QKV projection: one bf16 (N,D)x(D,3D) matmul, f32 accumulate ----
    qkv = (jnp.dot(x2_lp, wqkv_ref[...], preferred_element_type=f32)
           + bqkv_ref[...].astype(f32))      # (N, 3D) f32

    q2 = qkv[:, :d_model] * scale            # fold 1/sqrt(dk) into q
    k2 = qkv[:, d_model:2 * d_model]
    v2 = qkv[:, 2 * d_model:]

    # ---- head-major relayout (pure data movement, no per-head matmuls) --------
    # (N, H*dk) lanes -> (H*bt, S, dk) rows via bf16 VMEM scratch.
    for h in range(num_heads):
        lanes = slice(h * dk, (h + 1) * dk)
        rows = slice(h * bt, (h + 1) * bt)
        q_sc[rows] = q2[:, lanes].reshape(bt, seq, dk).astype(bf16)
        k_sc[rows] = k2[:, lanes].reshape(bt, seq, dk).astype(bf16)
        v_sc[rows] = v2[:, lanes].reshape(bt, seq, dk).astype(bf16)

    qh = q_sc[...]                            # (H*bt, S, dk) bf16
    kh = k_sc[...]
    vh = v_sc[...]

    # ---- batched attention over all (head, batch) pairs at once ---------------
    # TODO(synk): attention-mask support (module forward default is mask=None).
    s = jnp.einsum('bqd,bkd->bqk', qh, kh, preferred_element_type=f32)
    s = s - jnp.max(s, axis=-1, keepdims=True)
    p = jnp.exp(s)
    p = p * pl.reciprocal(jnp.sum(p, axis=-1, keepdims=True), approx=True)
    ctx = jnp.einsum('bqk,bkd->bqd', p.astype(bf16), vh,
                     preferred_element_type=f32)          # (H*bt, S, dk) f32

    # ---- heads back into the lane axis, then ONE output-projection matmul -----
    for h in range(num_heads):
        ctx_sc[:, h * dk:(h + 1) * dk] = (
            ctx[h * bt:(h + 1) * bt].reshape(n_tok, dk).astype(bf16))
    attn = (jnp.dot(ctx_sc[...], wo_ref[...], preferred_element_type=f32)
            + bo_ref[...].astype(f32))                    # (N, D) f32

    # ---- AddNorm 1 (dropout = identity in eval mode) ---------------------------
    h1 = _layernorm(x2 + attn, g1_ref[...].astype(f32), be1_ref[...].astype(f32))

    # ---- FFN: Linear -> GELU(erf) -> Linear, bf16 operands, f32 accumulate -----
    ff = (jnp.dot(h1.astype(bf16), w1_ref[...], preferred_element_type=f32)
          + b1_ref[...].astype(f32))
    ff = _gelu_exact(ff)
    ff = (jnp.dot(ff.astype(bf16), w2_ref[...], preferred_element_type=f32)
          + b2_ref[...].astype(f32))

    # ---- AddNorm 2 --------------------------------------------------------------
    out = _layernorm(h1 + ff, g2_ref[...].astype(f32), be2_ref[...].astype(f32))
    o_ref[...] = out.astype(o_ref.dtype)
    # TODO(synk): training-mode dropout (torch RNG not reproducible here).


def encoder_block_forward(x, params, *, num_heads, batch_tile=None):
    """x: (B, S, D) -> (B, S, D). Eval-mode EncoderBlock forward."""
    B, S, D = x.shape
    dff = params['w1'].shape[1]
    dk = D // num_heads
    f32, bf16 = jnp.float32, jnp.bfloat16

    # Batch tile: exact divisor of B (no padded rows), defaulting to >=2 grid
    # steps so v7x can shard the batch axis across both TensorCores.
    target = max(1, B // 2) if batch_tile is None else max(1, min(batch_tile, B))
    bt = 1
    for cand in range(target, 0, -1):
        if B % cand == 0:
            bt = cand
            break
    grid = (B // bt,)
    n_rows = bt * S

    # Weights prepared once outside the kernel: fused QKV, bf16 MXU operands.
    wqkv = jnp.concatenate([params['wq'], params['wk'], params['wv']], axis=1).astype(bf16)
    bqkv = jnp.concatenate([params['bq'], params['bk'], params['bv']], axis=1).astype(f32)
    wo = params['wo'].astype(bf16)
    bo = params['bo'].astype(f32)
    w1 = params['w1'].astype(bf16)
    b1 = params['b1'].astype(f32)
    w2 = params['w2'].astype(bf16)
    b2 = params['b2'].astype(f32)
    g1, be1 = params['g1'].astype(f32), params['be1'].astype(f32)
    g2, be2 = params['g2'].astype(f32), params['be2'].astype(f32)

    x2d = x.reshape(B * S, D)

    def const_spec(shape):
        idx = lambda i: (0,) * len(shape)
        try:
            # Grid-invariant weights: single buffer (halves their VMEM footprint).
            return pl.BlockSpec(shape, idx, pipeline_mode=pl.Buffered(1))
        except Exception:
            return pl.BlockSpec(shape, idx)

    in_specs = [
        pl.BlockSpec((n_rows, D), lambda i: (i, 0)),       # x token tile
        const_spec((D, 3 * D)), const_spec((1, 3 * D)),    # Wqkv, bqkv
        const_spec((D, D)), const_spec((1, D)),            # Wo, bo
        const_spec((1, D)), const_spec((1, D)),            # LN1 gamma, beta
        const_spec((D, dff)), const_spec((1, dff)),        # W1, b1
        const_spec((dff, D)), const_spec((1, D)),          # W2, b2
        const_spec((1, D)), const_spec((1, D)),            # LN2 gamma, beta
    ]

    n_tok = B * S
    flops = (2 * n_tok * D * 3 * D          # QKV projection
             + 4 * n_tok * S * D            # scores + context
             + 2 * n_tok * D * D            # output projection
             + 4 * n_tok * D * dff)         # FFN
    transcendentals = n_tok * S * num_heads + n_tok * dff
    bytes_accessed = (2 * n_tok * D * x.dtype.itemsize
                      + 2 * (3 * D * D + D * D + 2 * D * dff)
                      + 4 * (3 * D + D + dff + D + 4 * D))

    kernel = functools.partial(_encoder_block_kernel,
                               num_heads=num_heads, seq_len=S)
    out2d = pl.pallas_call(
        kernel,
        out_shape=jax.ShapeDtypeStruct((B * S, D), x.dtype),
        grid=grid,
        in_specs=in_specs,
        out_specs=pl.BlockSpec((n_rows, D), lambda i: (i, 0)),
        scratch_shapes=[
            pltpu.VMEM((num_heads * bt, S, dk), bf16),   # q (head-major)
            pltpu.VMEM((num_heads * bt, S, dk), bf16),   # k
            pltpu.VMEM((num_heads * bt, S, dk), bf16),   # v
            pltpu.VMEM((n_rows, D), bf16),               # context (lane-major)
        ],
        compiler_params=pltpu.CompilerParams(
            dimension_semantics=("parallel",),
            vmem_limit_bytes=64 * 1024 * 1024,
        ),
        cost_estimate=pl.CostEstimate(
            flops=flops,
            transcendentals=transcendentals,
            bytes_accessed=bytes_accessed,
        ),
    )(x2d, wqkv, bqkv, wo, bo, g1, be1, w1, b1, w2, b2, g2, be2)
    return out2d.reshape(B, S, D)


# ----------------------------- pure-JAX reference -----------------------------
def encoder_block_reference(x, params, *, num_heads):
    f32 = jnp.float32
    B, S, D = x.shape
    dk = D // num_heads
    xf = x.astype(f32)

    def lin(inp, w, b):
        return jnp.dot(inp, w.astype(f32), precision=_HIGHEST) + b.astype(f32)

    q = lin(xf, params['wq'], params['bq']).reshape(B, S, num_heads, dk).transpose(0, 2, 1, 3)
    k = lin(xf, params['wk'], params['bk']).reshape(B, S, num_heads, dk).transpose(0, 2, 1, 3)
    v = lin(xf, params['wv'], params['bv']).reshape(B, S, num_heads, dk).transpose(0, 2, 1, 3)

    s = jnp.einsum('bhqd,bhkd->bhqk', q, k, precision=_HIGHEST) / math.sqrt(dk)
    p = jax.nn.softmax(s, axis=-1)
    o = jnp.einsum('bhqk,bhkd->bhqd', p, v, precision=_HIGHEST)
    o = o.transpose(0, 2, 1, 3).reshape(B, S, D)
    attn_out = lin(o, params['wo'], params['bo'])

    def layernorm(xx, g, b):
        m = xx.mean(-1, keepdims=True)
        var = jnp.square(xx - m).mean(-1, keepdims=True)
        return (xx - m) / jnp.sqrt(var + _LN_EPS) * g.astype(f32) + b.astype(f32)

    h1 = layernorm(xf + attn_out, params['g1'], params['be1'])
    ff = lin(h1, params['w1'], params['b1'])
    ff = _gelu_exact(ff)
    ff = lin(ff, params['w2'], params['b2'])
    out = layernorm(h1 + ff, params['g2'], params['be2'])
    return out.astype(x.dtype)


if __name__ == "__main__":
    # Small shapes consistent with the module: batch=2, seq=8, d_model=32, heads=4, d_ff=64
    B, S, D, H, DFF = 2, 8, 32, 4, 64

    key = jax.random.PRNGKey(0)
    ks = jax.random.split(key, 17)

    def w(k, shape, scale=0.1):
        return scale * jax.random.normal(k, shape, dtype=jnp.float32)

    params = dict(
        wq=w(ks[0], (D, D)), bq=w(ks[1], (1, D)),
        wk=w(ks[2], (D, D)), bk=w(ks[3], (1, D)),
        wv=w(ks[4], (D, D)), bv=w(ks[5], (1, D)),
        wo=w(ks[6], (D, D)), bo=w(ks[7], (1, D)),
        g1=1.0 + w(ks[8], (1, D)), be1=w(ks[9], (1, D)),
        w1=w(ks[10], (D, DFF)), b1=w(ks[11], (1, DFF)),
        w2=w(ks[12], (DFF, D)), b2=w(ks[13], (1, D)),
        g2=1.0 + w(ks[14], (1, D)), be2=w(ks[15], (1, D)),
    )
    x = jax.random.normal(ks[16], (B, S, D), dtype=jnp.float32)

    out = jax.block_until_ready(encoder_block_forward(x, params, num_heads=H))
    ref = encoder_block_reference(x, params, num_heads=H)

    assert out.shape == (B, S, D)
    # bf16 MXU operands + approx reciprocal vs. the f32/HIGHEST reference:
    # tolerance relaxed accordingly (typical max error ~5e-3).
    max_err = float(jnp.max(jnp.abs(out - ref)))
    assert jnp.allclose(out, ref, atol=3e-2, rtol=3e-2), f"max_err={max_err}"

    print("KERNEL_OK")
</pallas_src>

<mosaic_0001>
module attributes {stable_mosaic.version = 11 : i64} {
  func.func @_encoder_block_kernel(%arg0: i32, %arg1: memref<8x32xf32, #tpu.memory_space<vmem>>, %arg2: memref<32x96xbf16, #tpu.memory_space<vmem>>, %arg3: memref<1x96xf32, #tpu.memory_space<vmem>>, %arg4: memref<32x32xbf16, #tpu.memory_space<vmem>>, %arg5: memref<1x32xf32, #tpu.memory_space<vmem>>, %arg6: memref<1x32xf32, #tpu.memory_space<vmem>>, %arg7: memref<1x32xf32, #tpu.memory_space<vmem>>, %arg8: memref<32x64xbf16, #tpu.memory_space<vmem>>, %arg9: memref<1x64xf32, #tpu.memory_space<vmem>>, %arg10: memref<64x32xbf16, #tpu.memory_space<vmem>>, %arg11: memref<1x32xf32, #tpu.memory_space<vmem>>, %arg12: memref<1x32xf32, #tpu.memory_space<vmem>>, %arg13: memref<1x32xf32, #tpu.memory_space<vmem>>, %arg14: memref<8x32xf32, #tpu.memory_space<vmem>>, %arg15: memref<4x8x8xbf16, #tpu.memory_space<vmem>>, %arg16: memref<4x8x8xbf16, #tpu.memory_space<vmem>>, %arg17: memref<4x8x8xbf16, #tpu.memory_space<vmem>>, %arg18: memref<8x32xbf16, #tpu.memory_space<vmem>>) attributes {dimension_semantics = [#tpu.dimension_semantics<parallel>], iteration_bounds = array<i64: 2>, scalar_prefetch = 0 : i64, scratch_operands = 4 : i64, tpu.core_type = #tpu.core_type<tc>, window_params = [{transform_indices = @transform_0, window_bounds = array<i64: 8, 32>}, {pipeline_mode = #tpu.pipeline_mode<synchronous>, transform_indices = @transform_1, window_bounds = array<i64: 32, 96>}, {pipeline_mode = #tpu.pipeline_mode<synchronous>, transform_indices = @transform_2, window_bounds = array<i64: 1, 96>}, {pipeline_mode = #tpu.pipeline_mode<synchronous>, transform_indices = @transform_3, window_bounds = array<i64: 32, 32>}, {pipeline_mode = #tpu.pipeline_mode<synchronous>, transform_indices = @transform_4, window_bounds = array<i64: 1, 32>}, {pipeline_mode = #tpu.pipeline_mode<synchronous>, transform_indices = @transform_5, window_bounds = array<i64: 1, 32>}, {pipeline_mode = #tpu.pipeline_mode<synchronous>, transform_indices = @transform_6, window_bounds = array<i64: 1, 32>}, {pipeline_mode = #tpu.pipeline_mode<synchronous>, transform_indices = @transform_7, window_bounds = array<i64: 32, 64>}, {pipeline_mode = #tpu.pipeline_mode<synchronous>, transform_indices = @transform_8, window_bounds = array<i64: 1, 64>}, {pipeline_mode = #tpu.pipeline_mode<synchronous>, transform_indices = @transform_9, window_bounds = array<i64: 64, 32>}, {pipeline_mode = #tpu.pipeline_mode<synchronous>, transform_indices = @transform_10, window_bounds = array<i64: 1, 32>}, {pipeline_mode = #tpu.pipeline_mode<synchronous>, transform_indices = @transform_11, window_bounds = array<i64: 1, 32>}, {pipeline_mode = #tpu.pipeline_mode<synchronous>, transform_indices = @transform_12, window_bounds = array<i64: 1, 32>}, {transform_indices = @transform_13, window_bounds = array<i64: 8, 32>}]} {
    %c0 = arith.constant 0 : index
    %c0_0 = arith.constant 0 : index
    %0 = vector.load %arg1[%c0, %c0_0] : memref<8x32xf32, #tpu.memory_space<vmem>>, vector<8x32xf32>
    %1 = arith.truncf %0 : vector<8x32xf32> to vector<8x32xbf16>
    %c0_1 = arith.constant 0 : index
    %c0_2 = arith.constant 0 : index
    %2 = vector.load %arg2[%c0_1, %c0_2] : memref<32x96xbf16, #tpu.memory_space<vmem>>, vector<32x96xbf16>
    %cst = arith.constant dense<0.000000e+00> : vector<8x96xf32>
    %3 = tpu.matmul %1, %2, %cst {dimension_numbers = #tpu.dot_dimension_numbers<[1], [0], [0], [1], [0, 0, 1, 1], [], []>} : vector<8x32xbf16>, vector<32x96xbf16>, vector<8x96xf32> -> vector<8x96xf32>
    %c0_3 = arith.constant 0 : index
    %c0_4 = arith.constant 0 : index
    %4 = vector.load %arg3[%c0_3, %c0_4] : memref<1x96xf32, #tpu.memory_space<vmem>>, vector<1x96xf32>
    %5 = vector.broadcast %4 : vector<1x96xf32> to vector<8x96xf32>
    %6 = arith.addf %3, %5 : vector<8x96xf32>
    %7 = vector.extract_strided_slice %6 {offsets = [0, 0], sizes = [8, 32], strides = [1, 1]} : vector<8x96xf32> to vector<8x32xf32>
    %cst_5 = arith.constant 0.353553385 : f32
    %8 = vector.broadcast %cst_5 : f32 to vector<8x32xf32>
    %9 = arith.mulf %7, %8 : vector<8x32xf32>
    %10 = vector.extract_strided_slice %6 {offsets = [0, 32], sizes = [8, 32], strides = [1, 1]} : vector<8x96xf32> to vector<8x32xf32>
    %11 = vector.extract_strided_slice %6 {offsets = [0, 64], sizes = [8, 32], strides = [1, 1]} : vector<8x96xf32> to vector<8x32xf32>
    %12 = vector.extract_strided_slice %9 {offsets = [0, 0], sizes = [8, 8], strides = [1, 1]} : vector<8x32xf32> to vector<8x8xf32>
    %13 = vector.shape_cast %12 : vector<8x8xf32> to vector<1x8x8xf32>
    %14 = arith.truncf %13 : vector<1x8x8xf32> to vector<1x8x8xbf16>
    %c0_6 = arith.constant 0 : index
    %c0_7 = arith.constant 0 : index
    %c0_8 = arith.constant 0 : index
    %15 = vector.load %arg15[%c0_6, %c0_7, %c0_8] : memref<4x8x8xbf16, #tpu.memory_space<vmem>>, vector<1x8x8xbf16>
    tpu.vector_store %arg15[%c0_6, %c0_7, %c0_8], %14 {strides = array<i32>} : memref<4x8x8xbf16, #tpu.memory_space<vmem>>, vector<1x8x8xbf16>,
    %16 = vector.extract_strided_slice %10 {offsets = [0, 0], sizes = [8, 8], strides = [1, 1]} : vector<8x32xf32> to vector<8x8xf32>
    %17 = vector.shape_cast %16 : vector<8x8xf32> to vector<1x8x8xf32>
    %18 = arith.truncf %17 : vector<1x8x8xf32> to vector<1x8x8xbf16>
    %c0_9 = arith.constant 0 : index
    %c0_10 = arith.constant 0 : index
    %c0_11 = arith.constant 0 : index
    %19 = vector.load %arg16[%c0_9, %c0_10, %c0_11] : memref<4x8x8xbf16, #tpu.memory_space<vmem>>, vector<1x8x8xbf16>
    tpu.vector_store %arg16[%c0_9, %c0_10, %c0_11], %18 {strides = array<i32>} : memref<4x8x8xbf16, #tpu.memory_space<vmem>>, vector<1x8x8xbf16>,
    %20 = vector.extract_strided_slice %11 {offsets = [0, 0], sizes = [8, 8], strides = [1, 1]} : vector<8x32xf32> to vector<8x8xf32>
    %21 = vector.shape_cast %20 : vector<8x8xf32> to vector<1x8x8xf32>
    %22 = arith.truncf %21 : vector<1x8x8xf32> to vector<1x8x8xbf16>
    %c0_12 = arith.constant 0 : index
    %c0_13 = arith.constant 0 : index
    %c0_14 = arith.constant 0 : index
    %23 = vector.load %arg17[%c0_12, %c0_13, %c0_14] : memref<4x8x8xbf16, #tpu.memory_space<vmem>>, vector<1x8x8xbf16>
    tpu.vector_store %arg17[%c0_12, %c0_13, %c0_14], %22 {strides = array<i32>} : memref<4x8x8xbf16, #tpu.memory_space<vmem>>, vector<1x8x8xbf16>,
    %24 = vector.extract_strided_slice %9 {offsets = [0, 8], sizes = [8, 8], strides = [1, 1]} : vector<8x32xf32> to vector<8x8xf32>
    %25 = vector.shape_cast %24 : vector<8x8xf32> to vector<1x8x8xf32>
    %26 = arith.truncf %25 : vector<1x8x8xf32> to vector<1x8x8xbf16>
    %c1 = arith.constant 1 : index
    %c0_15 = arith.constant 0 : index
    %c0_16 = arith.constant 0 : index
    %27 = vector.load %arg15[%c1, %c0_15, %c0_16] : memref<4x8x8xbf16, #tpu.memory_space<vmem>>, vector<1x8x8xbf16>
    tpu.vector_store %arg15[%c1, %c0_15, %c0_16], %26 {strides = array<i32>} : memref<4x8x8xbf16, #tpu.memory_space<vmem>>, vector<1x8x8xbf16>,
    %28 = vector.extract_strided_slice %10 {offsets = [0, 8], sizes = [8, 8], strides = [1, 1]} : vector<8x32xf32> to vector<8x8xf32>
    %29 = vector.shape_cast %28 : vector<8x8xf32> to vector<1x8x8xf32>
    %30 = arith.truncf %29 : vector<1x8x8xf32> to vector<1x8x8xbf16>
    %c1_17 = arith.constant 1 : index
    %c0_18 = arith.constant 0 : index
    %c0_19 = arith.constant 0 : index
    %31 = vector.load %arg16[%c1_17, %c0_18, %c0_19] : memref<4x8x8xbf16, #tpu.memory_space<vmem>>, vector<1x8x8xbf16>
    tpu.vector_store %arg16[%c1_17, %c0_18, %c0_19], %30 {strides = array<i32>} : memref<4x8x8xbf16, #tpu.memory_space<vmem>>, vector<1x8x8xbf16>,
    %32 = vector.extract_strided_slice %11 {offsets = [0, 8], sizes = [8, 8], strides = [1, 1]} : vector<8x32xf32> to vector<8x8xf32>
    %33 = vector.shape_cast %32 : vector<8x8xf32> to vector<1x8x8xf32>
    %34 = arith.truncf %33 : vector<1x8x8xf32> to vector<1x8x8xbf16>
    %c1_20 = arith.constant 1 : index
    %c0_21 = arith.constant 0 : index
    %c0_22 = arith.constant 0 : index
    %35 = vector.load %arg17[%c1_20, %c0_21, %c0_22] : memref<4x8x8xbf16, #tpu.memory_space<vmem>>, vector<1x8x8xbf16>
    tpu.vector_store %arg17[%c1_20, %c0_21, %c0_22], %34 {strides = array<i32>} : memref<4x8x8xbf16, #tpu.memory_space<vmem>>, vector<1x8x8xbf16>,
    %36 = vector.extract_strided_slice %9 {offsets = [0, 16], sizes = [8, 8], strides = [1, 1]} : vector<8x32xf32> to vector<8x8xf32>
    %37 = vector.shape_cast %36 : vector<8x8xf32> to vector<1x8x8xf32>
    %38 = arith.truncf %37 : vector<1x8x8xf32> to vector<1x8x8xbf16>
    %c2 = arith.constant 2 : index
    %c0_23 = arith.constant 0 : index
    %c0_24 = arith.constant 0 : index
    %39 = vector.load %arg15[%c2, %c0_23, %c0_24] : memref<4x8x8xbf16, #tpu.memory_space<vmem>>, vector<1x8x8xbf16>
    tpu.vector_store %arg15[%c2, %c0_23, %c0_24], %38 {strides = array<i32>} : memref<4x8x8xbf16, #tpu.memory_space<vmem>>, vector<1x8x8xbf16>,
    %40 = vector.extract_strided_slice %10 {offsets = [0, 16], sizes = [8, 8], strides = [1, 1]} : vector<8x32xf32> to vector<8x8xf32>
    %41 = vector.shape_cast %40 : vector<8x8xf32> to vector<1x8x8xf32>
    %42 = arith.truncf %41 : vector<1x8x8xf32> to vector<1x8x8xbf16>
    %c2_25 = arith.constant 2 : index
    %c0_26 = arith.constant 0 : index
    %c0_27 = arith.constant 0 : index
    %43 = vector.load %arg16[%c2_25, %c0_26, %c0_27] : memref<4x8x8xbf16, #tpu.memory_space<vmem>>, vector<1x8x8xbf16>
    tpu.vector_store %arg16[%c2_25, %c0_26, %c0_27], %42 {strides = array<i32>} : memref<4x8x8xbf16, #tpu.memory_space<vmem>>, vector<1x8x8xbf16>,
    %44 = vector.extract_strided_slice %11 {offsets = [0, 16], sizes = [8, 8], strides = [1, 1]} : vector<8x32xf32> to vector<8x8xf32>
    %45 = vector.shape_cast %44 : vector<8x8xf32> to vector<1x8x8xf32>
    %46 = arith.truncf %45 : vector<1x8x8xf32> to vector<1x8x8xbf16>
    %c2_28 = arith.constant 2 : index
    %c0_29 = arith.constant 0 : index
    %c0_30 = arith.constant 0 : index
    %47 = vector.load %arg17[%c2_28, %c0_29, %c0_30] : memref<4x8x8xbf16, #tpu.memory_space<vmem>>, vector<1x8x8xbf16>
    tpu.vector_store %arg17[%c2_28, %c0_29, %c0_30], %46 {strides = array<i32>} : memref<4x8x8xbf16, #tpu.memory_space<vmem>>, vector<1x8x8xbf16>,
    %48 = vector.extract_strided_slice %9 {offsets = [0, 24], sizes = [8, 8], strides = [1, 1]} : vector<8x32xf32> to vector<8x8xf32>
    %49 = vector.shape_cast %48 : vector<8x8xf32> to vector<1x8x8xf32>
    %50 = arith.truncf %49 : vector<1x8x8xf32> to vector<1x8x8xbf16>
    %c3 = arith.constant 3 : index
    %c0_31 = arith.constant 0 : index
    %c0_32 = arith.constant 0 : index
    %51 = vector.load %arg15[%c3, %c0_31, %c0_32] : memref<4x8x8xbf16, #tpu.memory_space<vmem>>, vector<1x8x8xbf16>
    tpu.vector_store %arg15[%c3, %c0_31, %c0_32], %50 {strides = array<i32>} : memref<4x8x8xbf16, #tpu.memory_space<vmem>>, vector<1x8x8xbf16>,
    %52 = vector.extract_strided_slice %10 {offsets = [0, 24], sizes = [8, 8], strides = [1, 1]} : vector<8x32xf32> to vector<8x8xf32>
    %53 = vector.shape_cast %52 : vector<8x8xf32> to vector<1x8x8xf32>
    %54 = arith.truncf %53 : vector<1x8x8xf32> to vector<1x8x8xbf16>
    %c3_33 = arith.constant 3 : index
    %c0_34 = arith.constant 0 : index
    %c0_35 = arith.constant 0 : index
    %55 = vector.load %arg16[%c3_33, %c0_34, %c0_35] : memref<4x8x8xbf16, #tpu.memory_space<vmem>>, vector<1x8x8xbf16>
    tpu.vector_store %arg16[%c3_33, %c0_34, %c0_35], %54 {strides = array<i32>} : memref<4x8x8xbf16, #tpu.memory_space<vmem>>, vector<1x8x8xbf16>,
    %56 = vector.extract_strided_slice %11 {offsets = [0, 24], sizes = [8, 8], strides = [1, 1]} : vector<8x32xf32> to vector<8x8xf32>
    %57 = vector.shape_cast %56 : vector<8x8xf32> to vector<1x8x8xf32>
    %58 = arith.truncf %57 : vector<1x8x8xf32> to vector<1x8x8xbf16>
    %c3_36 = arith.constant 3 : index
    %c0_37 = arith.constant 0 : index
    %c0_38 = arith.constant 0 : index
    %59 = vector.load %arg17[%c3_36, %c0_37, %c0_38] : memref<4x8x8xbf16, #tpu.memory_space<vmem>>, vector<1x8x8xbf16>
    tpu.vector_store %arg17[%c3_36, %c0_37, %c0_38], %58 {strides = array<i32>} : memref<4x8x8xbf16, #tpu.memory_space<vmem>>, vector<1x8x8xbf16>,
    %c0_39 = arith.constant 0 : index
    %c0_40 = arith.constant 0 : index
    %c0_41 = arith.constant 0 : index
    %60 = vector.load %arg15[%c0_39, %c0_40, %c0_41] : memref<4x8x8xbf16, #tpu.memory_space<vmem>>, vector<4x8x8xbf16>
    %c0_42 = arith.constant 0 : index
    %c0_43 = arith.constant 0 : index
    %c0_44 = arith.constant 0 : index
    %61 = vector.load %arg16[%c0_42, %c0_43, %c0_44] : memref<4x8x8xbf16, #tpu.memory_space<vmem>>, vector<4x8x8xbf16>
    %c0_45 = arith.constant 0 : index
    %c0_46 = arith.constant 0 : index
    %c0_47 = arith.constant 0 : index
    %62 = vector.load %arg17[%c0_45, %c0_46, %c0_47] : memref<4x8x8xbf16, #tpu.memory_space<vmem>>, vector<4x8x8xbf16>
    "tpu.trace_start"() <{level = 10 : i32, message = "bqd,bkd->bqk"}> : () -> ()
    %cst_48 = arith.constant dense<0.000000e+00> : vector<4x8x8xf32>
    %63 = tpu.matmul %60, %61, %cst_48 {dimension_numbers = #tpu.dot_dimension_numbers<[2], [2], [1], [1], [0, 0, 0, 1, 1, 1], [0], [0]>} : vector<4x8x8xbf16>, vector<4x8x8xbf16>, vector<4x8x8xf32> -> vector<4x8x8xf32>
    "tpu.trace_stop"() : () -> ()
    %cst_49 = arith.constant dense<0xFF800000> : vector<4x8xf32>
    %64 = vector.multi_reduction <maximumf>, %63, %cst_49 [2] : vector<4x8x8xf32> to vector<4x8xf32>
    %65 = vector.shape_cast %64 : vector<4x8xf32> to vector<4x8x1xf32>
    %66 = vector.broadcast %65 : vector<4x8x1xf32> to vector<4x8x8xf32>
    %67 = arith.subf %63, %66 : vector<4x8x8xf32>
    %68 = math.exp %67 : vector<4x8x8xf32>
    %cst_50 = arith.constant dense<0.000000e+00> : vector<4x8xf32>
    %69 = vector.multi_reduction <add>, %68, %cst_50 [2] : vector<4x8x8xf32> to vector<4x8xf32>
    %70 = vector.shape_cast %69 : vector<4x8xf32> to vector<4x8x1xf32>
    %71 = tpu.reciprocal %70 {approx = true} : vector<4x8x1xf32> -> vector<4x8x1xf32>
    %72 = vector.broadcast %71 : vector<4x8x1xf32> to vector<4x8x8xf32>
    %73 = arith.mulf %68, %72 : vector<4x8x8xf32>
    %74 = arith.truncf %73 : vector<4x8x8xf32> to vector<4x8x8xbf16>
    "tpu.trace_start"() <{level = 10 : i32, message = "bqk,bkd->bqd"}> : () -> ()
    %cst_51 = arith.constant dense<0.000000e+00> : vector<4x8x8xf32>
    %75 = tpu.matmul %74, %62, %cst_51 {dimension_numbers = #tpu.dot_dimension_numbers<[2], [1], [1], [2], [0, 0, 0, 1, 1, 2], [0], [0]>} : vector<4x8x8xbf16>, vector<4x8x8xbf16>, vector<4x8x8xf32> -> vector<4x8x8xf32>
    "tpu.trace_stop"() : () -> ()
    %76 = vector.extract_strided_slice %75 {offsets = [0, 0, 0], sizes = [1, 8, 8], strides = [1, 1, 1]} : vector<4x8x8xf32> to vector<1x8x8xf32>
    %77 = vector.shape_cast %76 : vector<1x8x8xf32> to vector<8x8xf32>
    %78 = arith.truncf %77 : vector<8x8xf32> to vector<8x8xbf16>
    %c0_52 = arith.constant 0 : index
    %c0_53 = arith.constant 0 : index
    %79 = vector.load %arg18[%c0_52, %c0_53] : memref<8x32xbf16, #tpu.memory_space<vmem>>, vector<8x8xbf16>
    tpu.vector_store %arg18[%c0_52, %c0_53], %78 {strides = array<i32>} : memref<8x32xbf16, #tpu.memory_space<vmem>>, vector<8x8xbf16>,
    %80 = vector.extract_strided_slice %75 {offsets = [1, 0, 0], sizes = [1, 8, 8], strides = [1, 1, 1]} : vector<4x8x8xf32> to vector<1x8x8xf32>
    %81 = vector.shape_cast %80 : vector<1x8x8xf32> to vector<8x8xf32>
    %82 = arith.truncf %81 : vector<8x8xf32> to vector<8x8xbf16>
    %c0_54 = arith.constant 0 : index
    %c8 = arith.constant 8 : index
    %83 = vector.load %arg18[%c0_54, %c8] : memref<8x32xbf16, #tpu.memory_space<vmem>>, vector<8x8xbf16>
    tpu.vector_store %arg18[%c0_54, %c8], %82 {strides = array<i32>} : memref<8x32xbf16, #tpu.memory_space<vmem>>, vector<8x8xbf16>,
    %84 = vector.extract_strided_slice %75 {offsets = [2, 0, 0], sizes = [1, 8, 8], strides = [1, 1, 1]} : vector<4x8x8xf32> to vector<1x8x8xf32>
    %85 = vector.shape_cast %84 : vector<1x8x8xf32> to vector<8x8xf32>
    %86 = arith.truncf %85 : vector<8x8xf32> to vector<8x8xbf16>
    %c0_55 = arith.constant 0 : index
    %c16 = arith.constant 16 : index
    %87 = vector.load %arg18[%c0_55, %c16] : memref<8x32xbf16, #tpu.memory_space<vmem>>, vector<8x8xbf16>
    tpu.vector_store %arg18[%c0_55, %c16], %86 {strides = array<i32>} : memref<8x32xbf16, #tpu.memory_space<vmem>>, vector<8x8xbf16>,
    %88 = vector.extract_strided_slice %75 {offsets = [3, 0, 0], sizes = [1, 8, 8], strides = [1, 1, 1]} : vector<4x8x8xf32> to vector<1x8x8xf32>
    %89 = vector.shape_cast %88 : vector<1x8x8xf32> to vector<8x8xf32>
    %90 = arith.truncf %89 : vector<8x8xf32> to vector<8x8xbf16>
    %c0_56 = arith.constant 0 : index
    %c24 = arith.constant 24 : index
    %91 = vector.load %arg18[%c0_56, %c24] : memref<8x32xbf16, #tpu.memory_space<vmem>>, vector<8x8xbf16>
    tpu.vector_store %arg18[%c0_56, %c24], %90 {strides = array<i32>} : memref<8x32xbf16, #tpu.memory_space<vmem>>, vector<8x8xbf16>,
    %c0_57 = arith.constant 0 : index
    %c0_58 = arith.constant 0 : index
    %92 = vector.load %arg18[%c0_57, %c0_58] : memref<8x32xbf16, #tpu.memory_space<vmem>>, vector<8x32xbf16>
    %c0_59 = arith.constant 0 : index
    %c0_60 = arith.constant 0 : index
    %93 = vector.load %arg4[%c0_59, %c0_60] : memref<32x32xbf16, #tpu.memory_space<vmem>>, vector<32x32xbf16>
    %cst_61 = arith.constant dense<0.000000e+00> : vector<8x32xf32>
    %94 = tpu.matmul %92, %93, %cst_61 {dimension_numbers = #tpu.dot_dimension_numbers<[1], [0], [0], [1], [0, 0, 1, 1], [], []>} : vector<8x32xbf16>, vector<32x32xbf16>, vector<8x32xf32> -> vector<8x32xf32>
    %c0_62 = arith.constant 0 : index
    %c0_63 = arith.constant 0 : index
    %95 = vector.load %arg5[%c0_62, %c0_63] : memref<1x32xf32, #tpu.memory_space<vmem>>, vector<1x32xf32>
    %96 = vector.broadcast %95 : vector<1x32xf32> to vector<8x32xf32>
    %97 = arith.addf %94, %96 : vector<8x32xf32>
    %98 = arith.addf %0, %97 : vector<8x32xf32>
    %c0_64 = arith.constant 0 : index
    %c0_65 = arith.constant 0 : index
    %99 = vector.load %arg6[%c0_64, %c0_65] : memref<1x32xf32, #tpu.memory_space<vmem>>, vector<1x32xf32>
    %c0_66 = arith.constant 0 : index
    %c0_67 = arith.constant 0 : index
    %100 = vector.load %arg7[%c0_66, %c0_67] : memref<1x32xf32, #tpu.memory_space<vmem>>, vector<1x32xf32>
    %cst_68 = arith.constant dense<0.000000e+00> : vector<8xf32>
    %101 = vector.multi_reduction <add>, %98, %cst_68 [1] : vector<8x32xf32> to vector<8xf32>
    %102 = vector.shape_cast %101 : vector<8xf32> to vector<8x1xf32>
    %cst_69 = arith.constant 3.200000e+01 : f32
    %103 = vector.broadcast %cst_69 : f32 to vector<8x1xf32>
    %104 = arith.divf %102, %103 : vector<8x1xf32>
    %105 = vector.broadcast %104 : vector<8x1xf32> to vector<8x32xf32>
    %106 = arith.subf %98, %105 : vector<8x32xf32>
    %107 = arith.mulf %106, %106 : vector<8x32xf32>
    %cst_70 = arith.constant dense<0.000000e+00> : vector<8xf32>
    %108 = vector.multi_reduction <add>, %107, %cst_70 [1] : vector<8x32xf32> to vector<8xf32>
    %109 = vector.shape_cast %108 : vector<8xf32> to vector<8x1xf32>
    %cst_71 = arith.constant 3.200000e+01 : f32
    %110 = vector.broadcast %cst_71 : f32 to vector<8x1xf32>
    %111 = arith.divf %109, %110 : vector<8x1xf32>
    %cst_72 = arith.constant 9.99999974E-6 : f32
    %112 = vector.broadcast %cst_72 : f32 to vector<8x1xf32>
    %113 = arith.addf %111, %112 : vector<8x1xf32>
    %114 = math.rsqrt %113 : vector<8x1xf32>
    %115 = vector.broadcast %104 : vector<8x1xf32> to vector<8x32xf32>
    %116 = arith.subf %98, %115 : vector<8x32xf32>
    %117 = vector.broadcast %114 : vector<8x1xf32> to vector<8x32xf32>
    %118 = arith.mulf %116, %117 : vector<8x32xf32>
    %119 = vector.broadcast %99 : vector<1x32xf32> to vector<8x32xf32>
    %120 = arith.mulf %118, %119 : vector<8x32xf32>
    %121 = vector.broadcast %100 : vector<1x32xf32> to vector<8x32xf32>
    %122 = arith.addf %120, %121 : vector<8x32xf32>
    %123 = arith.truncf %122 : vector<8x32xf32> to vector<8x32xbf16>
    %c0_73 = arith.constant 0 : index
    %c0_74 = arith.constant 0 : index
    %124 = vector.load %arg8[%c0_73, %c0_74] : memref<32x64xbf16, #tpu.memory_space<vmem>>, vector<32x64xbf16>
    %cst_75 = arith.constant dense<0.000000e+00> : vector<8x64xf32>
    %125 = tpu.matmul %123, %124, %cst_75 {dimension_numbers = #tpu.dot_dimension_numbers<[1], [0], [0], [1], [0, 0, 1, 1], [], []>} : vector<8x32xbf16>, vector<32x64xbf16>, vector<8x64xf32> -> vector<8x64xf32>
    %c0_76 = arith.constant 0 : index
    %c0_77 = arith.constant 0 : index
    %126 = vector.load %arg9[%c0_76, %c0_77] : memref<1x64xf32, #tpu.memory_space<vmem>>, vector<1x64xf32>
    %127 = vector.broadcast %126 : vector<1x64xf32> to vector<8x64xf32>
    %128 = arith.addf %125, %127 : vector<8x64xf32>
    %cst_78 = arith.constant 5.000000e-01 : f32
    %129 = vector.broadcast %cst_78 : f32 to vector<8x64xf32>
    %130 = arith.mulf %129, %128 : vector<8x64xf32>
    %cst_79 = arith.constant 0.707106769 : f32
    %131 = vector.broadcast %cst_79 : f32 to vector<8x64xf32>
    %132 = arith.mulf %128, %131 : vector<8x64xf32>
    %133 = math.erf %132 : vector<8x64xf32>
    %cst_80 = arith.constant 1.000000e+00 : f32
    %134 = vector.broadcast %cst_80 : f32 to vector<8x64xf32>
    %135 = arith.addf %134, %133 : vector<8x64xf32>
    %136 = arith.mulf %130, %135 : vector<8x64xf32>
    %137 = arith.truncf %136 : vector<8x64xf32> to vector<8x64xbf16>
    %c0_81 = arith.constant 0 : index
    %c0_82 = arith.constant 0 : index
    %138 = vector.load %arg10[%c0_81, %c0_82] : memref<64x32xbf16, #tpu.memory_space<vmem>>, vector<64x32xbf16>
    %cst_83 = arith.constant dense<0.000000e+00> : vector<8x32xf32>
    %139 = tpu.matmul %137, %138, %cst_83 {dimension_numbers = #tpu.dot_dimension_numbers<[1], [0], [0], [1], [0, 0, 1, 1], [], []>} : vector<8x64xbf16>, vector<64x32xbf16>, vector<8x32xf32> -> vector<8x32xf32>
    %c0_84 = arith.constant 0 : index
    %c0_85 = arith.constant 0 : index
    %140 = vector.load %arg11[%c0_84, %c0_85] : memref<1x32xf32, #tpu.memory_space<vmem>>, vector<1x32xf32>
    %141 = vector.broadcast %140 : vector<1x32xf32> to vector<8x32xf32>
    %142 = arith.addf %139, %141 : vector<8x32xf32>
    %143 = arith.addf %122, %142 : vector<8x32xf32>
    %c0_86 = arith.constant 0 : index
    %c0_87 = arith.constant 0 : index
    %144 = vector.load %arg12[%c0_86, %c0_87] : memref<1x32xf32, #tpu.memory_space<vmem>>, vector<1x32xf32>
    %c0_88 = arith.constant 0 : index
    %c0_89 = arith.constant 0 : index
    %145 = vector.load %arg13[%c0_88, %c0_89] : memref<1x32xf32, #tpu.memory_space<vmem>>, vector<1x32xf32>
    %cst_90 = arith.constant dense<0.000000e+00> : vector<8xf32>
    %146 = vector.multi_reduction <add>, %143, %cst_90 [1] : vector<8x32xf32> to vector<8xf32>
    %147 = vector.shape_cast %146 : vector<8xf32> to vector<8x1xf32>
    %cst_91 = arith.constant 3.200000e+01 : f32
    %148 = vector.broadcast %cst_91 : f32 to vector<8x1xf32>
    %149 = arith.divf %147, %148 : vector<8x1xf32>
    %150 = vector.broadcast %149 : vector<8x1xf32> to vector<8x32xf32>
    %151 = arith.subf %143, %150 : vector<8x32xf32>
    %152 = arith.mulf %151, %151 : vector<8x32xf32>
    %cst_92 = arith.constant dense<0.000000e+00> : vector<8xf32>
    %153 = vector.multi_reduction <add>, %152, %cst_92 [1] : vector<8x32xf32> to vector<8xf32>
    %154 = vector.shape_cast %153 : vector<8xf32> to vector<8x1xf32>
    %cst_93 = arith.constant 3.200000e+01 : f32
    %155 = vector.broadcast %cst_93 : f32 to vector<8x1xf32>
    %156 = arith.divf %154, %155 : vector<8x1xf32>
    %cst_94 = arith.constant 9.99999974E-6 : f32
    %157 = vector.broadcast %cst_94 : f32 to vector<8x1xf32>
    %158 = arith.addf %156, %157 : vector<8x1xf32>
    %159 = math.rsqrt %158 : vector<8x1xf32>
    %160 = vector.broadcast %149 : vector<8x1xf32> to vector<8x32xf32>
    %161 = arith.subf %143, %160 : vector<8x32xf32>
    %162 = vector.broadcast %159 : vector<8x1xf32> to vector<8x32xf32>
    %163 = arith.mulf %161, %162 : vector<8x32xf32>
    %164 = vector.broadcast %144 : vector<1x32xf32> to vector<8x32xf32>
    %165 = arith.mulf %163, %164 : vector<8x32xf32>
    %166 = vector.broadcast %145 : vector<1x32xf32> to vector<8x32xf32>
    %167 = arith.addf %165, %166 : vector<8x32xf32>
    %c0_95 = arith.constant 0 : index
    %c0_96 = arith.constant 0 : index
    %168 = vector.load %arg14[%c0_95, %c0_96] : memref<8x32xf32, #tpu.memory_space<vmem>>, vector<8x32xf32>
    tpu.vector_store %arg14[%c0_95, %c0_96], %167 {strides = array<i32>} : memref<8x32xf32, #tpu.memory_space<vmem>>, vector<8x32xf32>,
    return
  }
  func.func @transform_0(%arg0: i32) -> (i32, i32) {
    %c0_i32 = arith.constant 0 : i32
    %c0_i32_0 = arith.constant 0 : i32
    return %arg0, %c0_i32 : i32, i32
  }
  func.func @transform_1(%arg0: i32) -> (i32, i32) {
    %c0_i32 = arith.constant 0 : i32
    %c0_i32_0 = arith.constant 0 : i32
    %c0_i32_1 = arith.constant 0 : i32
    return %c0_i32, %c0_i32_0 : i32, i32
  }
  func.func @transform_2(%arg0: i32) -> (i32, i32) {
    %c0_i32 = arith.constant 0 : i32
    %c0_i32_0 = arith.constant 0 : i32
    %c0_i32_1 = arith.constant 0 : i32
    return %c0_i32, %c0_i32_0 : i32, i32
  }
  func.func @transform_3(%arg0: i32) -> (i32, i32) {
    %c0_i32 = arith.constant 0 : i32
    %c0_i32_0 = arith.constant 0 : i32
    %c0_i32_1 = arith.constant 0 : i32
    return %c0_i32, %c0_i32_0 : i32, i32
  }
  func.func @transform_4(%arg0: i32) -> (i32, i32) {
    %c0_i32 = arith.constant 0 : i32
    %c0_i32_0 = arith.constant 0 : i32
    %c0_i32_1 = arith.constant 0 : i32
    return %c0_i32, %c0_i32_0 : i32, i32
  }
  func.func @transform_5(%arg0: i32) -> (i32, i32) {
    %c0_i32 = arith.constant 0 : i32
    %c0_i32_0 = arith.constant 0 : i32
    %c0_i32_1 = arith.constant 0 : i32
    return %c0_i32, %c0_i32_0 : i32, i32
  }
  func.func @transform_6(%arg0: i32) -> (i32, i32) {
    %c0_i32 = arith.constant 0 : i32
    %c0_i32_0 = arith.constant 0 : i32
    %c0_i32_1 = arith.constant 0 : i32
    return %c0_i32, %c0_i32_0 : i32, i32
  }
  func.func @transform_7(%arg0: i32) -> (i32, i32) {
    %c0_i32 = arith.constant 0 : i32
    %c0_i32_0 = arith.constant 0 : i32
    %c0_i32_1 = arith.constant 0 : i32
    return %c0_i32, %c0_i32_0 : i32, i32
  }
  func.func @transform_8(%arg0: i32) -> (i32, i32) {
    %c0_i32 = arith.constant 0 : i32
    %c0_i32_0 = arith.constant 0 : i32
    %c0_i32_1 = arith.constant 0 : i32
    return %c0_i32, %c0_i32_0 : i32, i32
  }
  func.func @transform_9(%arg0: i32) -> (i32, i32) {
    %c0_i32 = arith.constant 0 : i32
    %c0_i32_0 = arith.constant 0 : i32
    %c0_i32_1 = arith.constant 0 : i32
    return %c0_i32, %c0_i32_0 : i32, i32
  }
  func.func @transform_10(%arg0: i32) -> (i32, i32) {
    %c0_i32 = arith.constant 0 : i32
    %c0_i32_0 = arith.constant 0 : i32
    %c0_i32_1 = arith.constant 0 : i32
    return %c0_i32, %c0_i32_0 : i32, i32
  }
  func.func @transform_11(%arg0: i32) -> (i32, i32) {
    %c0_i32 = arith.constant 0 : i32
    %c0_i32_0 = arith.constant 0 : i32
    %c0_i32_1 = arith.constant 0 : i32
    return %c0_i32, %c0_i32_0 : i32, i32
  }
  func.func @transform_12(%arg0: i32) -> (i32, i32) {
    %c0_i32 = arith.constant 0 : i32
    %c0_i32_0 = arith.constant 0 : i32
    %c0_i32_1 = arith.constant 0 : i32
    return %c0_i32, %c0_i32_0 : i32, i32
  }
  func.func @transform_13(%arg0: i32) -> (i32, i32) {
    %c0_i32 = arith.constant 0 : i32
    %c0_i32_0 = arith.constant 0 : i32
    return %arg0, %c0_i32 : i32, i32
  }
}

</mosaic_0001>

<bundles_post_ra>
// kernel: tpu_custom_call.1
= control target key start
LH: loop header
LB: loop body
LE: loop exit
PB: predicated region body
PF: predicated region fallthrough
CT: control target
= control target key end

     0   :  { %s2489_s0 = inlined_call_operand.vmem [shape: f32[16,32], index: 0, kind: input, shape index: {}]   ;;  %s2490_s1 = inlined_call_operand.vmem [shape: bf16[32,96], index: 1, kind: input, shape index: {}]   ;;  %s2491_s2 = inlined_call_operand.hbm [shape: f32[1,96], index: 2, kind: input, shape index: {}]   ;;  %s2492_s3 = inlined_call_operand.vmem [shape: bf16[32,32], index: 3, kind: input, shape index: {}]   ;;  %s2493_s4 = inlined_call_operand.hbm [shape: f32[1,32], index: 4, kind: input, shape index: {}]   ;;  %s2494_s5 = inlined_call_operand.hbm [shape: f32[1,32], index: 5, kind: input, shape index: {}]   ;;  %s2495_s6 = inlined_call_operand.hbm [shape: f32[1,32], index: 6, kind: input, shape index: {}]   ;;  %s2496_s7 = inlined_call_operand.hbm [shape: bf16[32,64], index: 7, kind: input, shape index: {}]   ;;  %s2497_s8 = inlined_call_operand.hbm [shape: f32[1,64], index: 8, kind: input, shape index: {}]   ;;  %s2498_s9 = inlined_call_operand.vmem [shape: bf16[64,32], index: 9, kind: input, shape index: {}]   ;;  %s2499_s10 = inlined_call_operand.vmem [shape: f32[1,32], index: 10, kind: input, shape index: {}]   ;;  %s2500_s11 = inlined_call_operand.vmem [shape: f32[1,32], index: 11, kind: input, shape index: {}]   ;;  %s2501_s12 = inlined_call_operand.vmem [shape: f32[1,32], index: 12, kind: input, shape index: {}]   ;;  %s2502_s13 = inlined_call_operand.hbm [shape: f32[16,32], index: 13, kind: output, shape index: {}]  }
   0x1   :  { %2510 = sst [smem:[#allocation27_spill]] %s2491_s2 }
   0x2   :  { %2511 = sst [smem:[#allocation28_spill]] %s2493_s4 }
   0x3   :  { %18 = vsyncpa [#allocation7], 0 }
   0x4   :  { %19 = vsyncpa [#allocation10], 0 }
   0x5   :  { %20 = vsyncpa [#allocation13], 0 }
   0x6   :  { %21 = vsyncpa [#allocation16], 0 }
   0x7   :  { %22 = vsyncpa [#allocation8], 0 }
   0x8   :  { %24 = vsyncpa [#allocation8 + $0x1], 0  ;;  %s2180_s25 = smov 0   ;;  %s2182_s26 = smov 0  }
   0x9   :  { %s2184_s27 = smov 0   ;;  %s2186_s28 = smov 0  }
   0xa LB: > { %2512 = sst [smem:[#allocation23_spill]] %s2079_s27  ;;  %s2201_s29 = sadd.s32 4294967295, %s2083_s28   ;;  %s2083_s28 = sphi %s2186_s28, %s2535_s28   ;;  %s2079_s27 = sphi %s2184_s27, %s2537_s27   ;;  %s2075_s26 = sphi %s2182_s26, %s2539_s26   ;;  %s2071_s25 = sphi %s2180_s25, %s2538_s25  }
   0xb   : > { %s1525_s30 = sadd.s32 4294967294, %s2083_s28   ;;  %s2205_s14 = sadd.s32 1, %s2083_s28  }
   0xc   : > { %2513 = sst [smem:[#allocation24_spill]] %s2205_s14  ;;  %s315_s15 = sadd.s32 1, %s2079_s27 }
   0xd   : > { %s312_s16 = ssub.s32 %s2083_s28, %s2205_s14  ;;  %p325_p0 = scmp.ne.s32.totalorder %s2079_s27, %s2075_s26 }
   0xe   : > { %p313_p1 = scmp.eq.s32.totalorder %s312_s16, 0  ;;  %p326_p2 = scmp.eq.s32.totalorder %s2201_s29, 1 }
   0xf   : > { %p331_p3 = scmp.ne.s32.totalorder %s2075_s26, %s2071_s25  ;;  %p332_p4 = scmp.eq.s32.totalorder %s1525_s30, 1 }
  0x10   : > { %s2216_s17 = scalar_select %p313_p1, %s2079_s27, %s315_s15  }
  0x11   : > { %p2218_p5 = por %p326_p2, %p325_p0  ;;  %p2222_p6 = por %p332_p4, %p331_p3 }
  0x12   : > { %2514 = sst [smem:[#allocation25_spill]] %s2216_s17  ;;  %p1526_p7 = scmp.ge.s32.totalorder %s2083_s28, 1 }
  0x13   : > { %s2515_s18 = scalar_select %p2218_p5, 1, 0 }
  0x14   : > { %s2516_s19 = scalar_select %p2222_p6, 1, 0 }
  0x15   : > { %p339_p8 = scmp.lt.s32.totalorder %s2083_s28, 3  ;;  %p2506_p9 = scmp.eq.s32.totalorder %s2201_s29, 0 }
  0x16   : > { %2517 = sst [smem:[#allocation26_spill]] %s2516_s19  ;;  %s2085_s21 = smov [#allocation9]  }
  0x17   : > { %p2229_p10 = pnand %p1526_p7, %p339_p8  ;;  %s369_s22 = sshll.u32 %s2085_s21, 4  ;;  %s370_s22 = int_to_ptr.vmem [resolvable:$true] %s369_s22 }
  0x18   : > { %s2086_s23 = smov [#allocation12]   ;;  %s2087_s15 = smov [#allocation6]  }
  0x19   : > { %s2518_s20 = scalar_select %p2229_p10, 1, 0 }
  0x1a   : > { %p1727_p11 = pneg %p2229_p10  ;;  %s391_s24 = sshll.u32 %s2086_s23, 4  ;;  %s392_s24 = int_to_ptr.vmem [resolvable:$true] %s391_s24 }
  0x1b   : > { %s355_s16 = sshll.u32 %s2087_s15, 4  ;;  %s1862_s21 = scalar_lea.vmem %s370_s22, 16  ;;  %s2241_s16 = int_to_ptr.vmem [resolvable:$true] %s355_s16 }
  0x1c   : > { %p2237_p12 = pnand %p2506_p9, %p1727_p11  ;;  %p1863_p0 = scmp.ne.s32.totalorder %s370_s22, %s1862_s21 }
  0x1d   : > { %s1869_s23 = scalar_lea.vmem %s370_s22, 32  ;;  %p1870_p3 = scmp.lt.s32.totalorder %s370_s22, %s370_s22 }
  0x1e   : > { %p2245_p13 = pneg %p2237_p12  ;;  %p1871_p4 = scmp.lt.s32.totalorder %s1869_s23, %s1862_s21 }
  0x20   : > { %p1865_p1 = pnand %p1863_p0, %p2245_p13  ;;  %p1872_p7 = por %p1871_p4, %p1870_p3 }
  0x22   : > { %p1866_p2 = pneg %p1865_p1 }
  0x24   : > { %p1873_p8 = pnand %p1872_p7, %p1866_p2 }
  0x26   : > { %1876 = shalt.err (!%p1873_p8)
}
  0x27   : > { %s2521_s4 = sld [smem:[#allocation28_spill]]  ;;  %s1888_s14 = scalar_lea.vmem %s392_s24, 16 }
  0x28   : > { %p1889_p11 = scmp.ne.s32.totalorder %s392_s24, %s1888_s14  ;;  %s1895_s19 = scalar_lea.vmem %s392_s24, 32 }
  0x29   : > { %p1896_p0 = scmp.lt.s32.totalorder %s392_s24, %s392_s24  ;;  %p1897_p1 = scmp.lt.s32.totalorder %s1895_s19, %s1888_s14 }
  0x2a   : > { %p1891_p9 = pnand %p1889_p11, %p2245_p13 }
  0x2b   : > { %p1898_p5 = por %p1897_p1, %p1896_p0 }
  0x2c   : > { %p1892_p6 = pneg %p1891_p9 }
  0x2d   : > { %1733 = dma.hbm_to_vmem [thread:$0]  (!%p2237_p12), %s2521_s4, 16, %s370_s22, [#allocation10]  }
  0x2e   : > { %p1899_p10 = pnand %p1898_p5, %p1892_p6 }
  0x30   : > { %1902 = shalt.err (!%p1899_p10)
}
  0x31   : > { %1739 = dma.hbm_to_vmem [thread:$0]  (!%p2237_p12), %s2495_s6, 16, %s392_s24, [#allocation13]  }
  0x32   : > { %s1914_s27 = scalar_lea.vmem %s2241_s16, 16  ;;  %s1921_s14 = scalar_lea.vmem %s2241_s16, 32 }
  0x33   : > { %p1915_p2 = scmp.ne.s32.totalorder %s2241_s16, %s1914_s27  ;;  %p1922_p5 = scmp.lt.s32.totalorder %s2241_s16, %s2241_s16 }
  0x34   : > { %p1923_p6 = scmp.lt.s32.totalorder %s1921_s14, %s1914_s27 }
  0x35   : > { %p1917_p9 = pnand %p1915_p2, %p2245_p13 }
  0x36   : > { %p1924_p10 = por %p1923_p6, %p1922_p5 }
  0x37   : > { %p1918_p3 = pneg %p1917_p9 }
  0x39   : > { %p1925_p4 = pnand %p1924_p10, %p1918_p3 }
  0x3b   : > { %1928 = shalt.err (!%p1925_p4)
}
  0x3c   : > { %s2522_s2 = sld [smem:[#allocation27_spill]]  ;;  %s2088_s24 = smov [#allocation11]  }
  0x3d   : > { %s380_s15 = sshll.u32 %s2088_s24, 4  ;;  %s2089_s21 = smov [#allocation14]   ;;  %s381_s15 = int_to_ptr.vmem [resolvable:$true] %s380_s15 }
  0x3e   : > { %s401_s23 = sshll.u32 %s2089_s21, 4  ;;  %s1940_s4 = scalar_lea.vmem %s381_s15, 16  ;;  %s402_s23 = int_to_ptr.vmem [resolvable:$true] %s401_s23 }
  0x3f   : > { %p1941_p7 = scmp.ne.s32.totalorder %s381_s15, %s1940_s4  ;;  %s1947_s27 = scalar_lea.vmem %s381_s15, 32 }
  0x40   : > { %p1948_p0 = scmp.lt.s32.totalorder %s381_s15, %s381_s15  ;;  %p1949_p1 = scmp.lt.s32.totalorder %s1947_s27, %s1940_s4 }
  0x41   : > { %p1943_p8 = pnand %p1941_p7, %p2245_p13 }
  0x42   : > { %1730 = dma.hbm_to_vmem [thread:$0]  (!%p2237_p12), %s2522_s2, 16, %s2241_s16, [#allocation7]  }
  0x43   : > { %p1944_p11 = pneg %p1943_p8  ;;  %p1950_p2 = por %p1949_p1, %p1948_p0 }
  0x45   : > { %p1951_p9 = pnand %p1950_p2, %p1944_p11 }
  0x47   : > { %1954 = shalt.err (!%p1951_p9)
}
  0x48   : > { %1736 = dma.hbm_to_vmem [thread:$0]  (!%p2237_p12), %s2494_s5, 16, %s381_s15, [#allocation10]  }
  0x49   : > { %s1966_s19 = scalar_lea.vmem %s402_s23, 256  ;;  %p1974_p10 = scmp.lt.s32.totalorder %s402_s23, %s402_s23 }
  0x4a   : > { %p1967_p3 = scmp.ne.s32.totalorder %s402_s23, %s1966_s19  ;;  %p1975_p4 = scmp.lt.s32.totalorder %s1966_s19, %s1966_s19 }
  0x4c   : > { %p1969_p5 = pnand %p1967_p3, %p2245_p13  ;;  %p1976_p7 = por %p1975_p4, %p1974_p10 }
  0x4e   : > { %p1970_p6 = pneg %p1969_p5 }
  0x50   : > { %p1977_p8 = pnand %p1976_p7, %p1970_p6 }
  0x52   : > { %1980 = shalt.err (!%p1977_p8)
}
  0x53   : > { %s2090_s4 = smov 64   ;;  %s2091_s22 = smov 4  }
  0x54   : > { %1742 = dma.hbm_to_vmem [thread:$0]  (!%p2237_p12), %s2496_s7, 256, %s402_s23, [#allocation13], %s2090_s4, %s2090_s4, %s2091_s22  }
  0x55   : > { %s2092_s15 = smov [#allocation15]  }
  0x56   : > { %s415_s27 = sshll.u32 %s2092_s15, 4  ;;  %s416_s27 = int_to_ptr.vmem [resolvable:$true] %s415_s27 }
  0x57   : > { %s1992_s14 = scalar_lea.vmem %s416_s27, 16  ;;  %s1999_s16 = scalar_lea.vmem %s416_s27, 32 }
  0x58   : > { %p1993_p11 = scmp.ne.s32.totalorder %s416_s27, %s1992_s14  ;;  %p2000_p2 = scmp.lt.s32.totalorder %s416_s27, %s416_s27 }
  0x59   : > { %p2001_p9 = scmp.lt.s32.totalorder %s1999_s16, %s1992_s14 }
  0x5a   : > { %p1995_p0 = pnand %p1993_p11, %p2245_p13 }
  0x5b   : > { %p2002_p3 = por %p2001_p9, %p2000_p2 }
  0x5c   : > { %p1996_p1 = pneg %p1995_p0 }
  0x5e   : > { %p2003_p5 = pnand %p2002_p3, %p1996_p1 }
  0x60   : > { %2006 = shalt.err (!%p2003_p5)
}
  0x61   : > { %1745 = dma.hbm_to_vmem [thread:$0]  (!%p2237_p12), %s2497_s8, 16, %s416_s27, [#allocation16]  }
  0x62   : > { %p2523_p6 = scmp.ne.s32.totalorder %s2518_s20, 0 }
  0x63   : > { %p2524_p10 = scmp.eq.s32.totalorder (!%p2523_p6), %s2201_s29, 0 }
  0x64   : > { %447 = sbr.rel (%p2523_p6) target bundleno = 2532 (0x9e4), region = 72 }
  0x69   : > { %2050 = dma.done.wait (%p2524_p10), [#allocation7], 16   ;;  %p2525_p13 = pmov %p2524_p10 }
  0x6a   : > { %p2526_p4 = pmov %p2524_p10 }
  0x6b   : > { %2052 = vsyncadd (%p2525_p13), [#allocation7], 4294967280 }
  0x6c   : > { %2054 = dma.done.wait (%p2526_p4), [#allocation10], 32   ;;  %p2527_p7 = pmov %p2526_p4 }
  0x6d   : > { %p2528_p8 = pmov %p2526_p4 }
  0x6e   : > { %2056 = vsyncadd (%p2527_p7), [#allocation10], 4294967264 }
  0x6f   : > { %2058 = dma.done.wait (%p2528_p8), [#allocation13], 272   ;;  %p2529_p12 = pmov %p2526_p4 }
  0x70   : > { %p2530_p11 = pmov %p2526_p4 }
  0x71   : > { %2060 = vsyncadd (%p2529_p12), [#allocation13], 4294967024 }
  0x72   : > { %2062 = dma.done.wait (%p2530_p11), [#allocation16], 16   ;;  %p2531_p0 = pmov %p2526_p4 }
  0x73   : > { %p510_p1 = scmp.lt.s32.totalorder %s2201_s29, 1  ;;  %v2093_v0 = vmov 0.0   ;;  %vm2094_vm0 = vmmov 0   ;;  %v1819_v1 = vld [vmem:[%s2490_s1 + $0x8] sm:$0xff]   ;;  %v1820_v2 = vld [vmem:[%s2490_s1] sm:$0xff]   ;;  %vm540_vm1 = vcmask 261120  }
  0x74   : > { %2064 = vsyncadd (%p2531_p0), [#allocation16], 4294967280  ;;  %1617 = vmatprep.subr.bf16.mxu0 %v2093_v0  ;;  %1621 = vmatprep.mubr.msk.bf16.mxu0 %vm2094_vm0, %v2093_v0  ;;  %v1543_v5 = vld [vmem:[#allocation6] ss:$0 sm:$0xff]  ;;  %vm586_vm2 = vcmask 60416   ;;  %s2095_s15 = smov 80  }
  0x75   : > { %s511_s2 = scalar_select %p510_p1, %s2201_s29, 1  ;;  %1625 = vmatprep.subr.bf16.mxu1 %v2093_v0  ;;  %1627 = vmatprep.mubr.msk.bf16.mxu1 %vm2094_vm0, %v2093_v0  ;;  %vm660_vm3 = vcmask 64512   ;;  %vm896_vm4 = vcmask 1043456   ;;  %vm1087_vm5 = vcmask 126016   ;;  %vm1096_vm6 = vcmask 191616  }
  0x76   : > { %1618 = vmatpush3.bf16.msra.mxu0 %v1819_v1  ;;  %s2096_s27 = smov 96   ;;  %s2097_s14 = smov 88   ;;  %vm1105_vm7 = vcmask 257216   ;;  %vm1317_vm8 = vcmask 523264  }
  0x77   : > { %s1542_s17 = sshll.u32 %s511_s2, 3  ;;  %1619 = vmatprep.subr.bf16.mxu0 %v2093_v0  ;;  %s2098_s16 = smov 120  }
  0x78   : > { %s513_s23 = scalar_lea.vmem %s2489_s0, %s1542_s17  ;;  %s2099_s19 = smov 72  }
  0x79   : > { %v2332_v3 = vld [vmem:[%s513_s23] sm:$0xff]  ;;  %s2100_s2 = smov 112   ;;  %s2101_s17 = smov 104  }
  0x7a   : > { %v516_v4 = vpack.c.bf16 %v2332_v3, %v2332_v3  ;;  %1620 = vmatpush3.bf16.msra.mxu0 %v1820_v2  ;;  %s2102_s20 = smov 56   ;;  %s2103_s30 = smov 64  }
  0x7b   : > { %1631 = vmatprep.subr.bf16.mxu0 %v2093_v0  ;;  %s2104_s23 = smov 48   ;;  %s2105_s4 = smov 40  }
  0x7c   : > { %p2532_p9 = scmp.ne.s32.totalorder %s2515_s18, 0 }
  0x7d   : > { %1622 = vmatmul.mubr.msk.bf16.vlgmr.msra.gmra.mxu0 %vm540_vm1, %v516_v4 }
  0x7e   : > { %1633 = vmatprep.mubr.msk.bf16.mxu0 %vm2094_vm0, %v2093_v0 }
 0x13d   : > { %v578_v6 = vpop.f32.mrf.mxu0 }
 0x13e   : > { %v579_v7 = vadd.f32 %v1543_v5, %v578_v6 }
 0x13f   : > { %v1623_v8 = vpop.f32.mrf.mxu0 }
 0x140   : > { %v584_v9 = vmul.f32 0.35355338, %v579_v7  ;;  %v2341_v10 = vpack.c.bf16 %v579_v7, %v579_v7 }
 0x141   : > { %v581_v11 = vpop.f32.mrf.mxu0 }
 0x142   : > { %v585_v12 = vpack.c.bf16 %v584_v9, %v584_v9  ;;  %623 = vrot.lane.b32.xlu1 %v2341_v10, %s2095_s15  ;;  %592 = vrot.lane.b32.xlu0 %v2341_v10, %s2096_s27  ;;  %s2106_s27 = smov 8   ;;  %s507_s15 = sand.u32 1, %s2075_s26  }
 0x143   : > { %v1624_v13 = vpop.f32.mrf.mxu0  ;;  %s1393_s24 = scalar_lea.sflag [#allocation8], %s507_s15 }
 0x144   : > { %587 = vst.msk [vmem:[#allocation2] sm:$0xf] %vm586_vm2, %v585_v12 }
 0x146   : > { %608 = vrot.lane.b32.xlu0 %v2341_v10, %s2097_s14  ;;  %603 = vrot.lane.b32.xlu1 %v585_v12, %s2098_s16  ;;  %s2107_s14 = smov 16   ;;  %s2108_s16 = smov 24  }
 0x14a   : > { %638 = vrot.lane.b32.xlu0 %v2341_v10, %s2099_s19  ;;  %618 = vrot.lane.b32.xlu1 %v585_v12, %s2100_s2 }
 0x14b   : > { %v648_v26 = vld [vmem:[#allocation2] sm:$0xf] }
 0x14e   : > { %633 = vrot.lane.b32.xlu0 %v585_v12, %s2101_s17  ;;  %s1579_s17 = sshll.u32 %s2201_s29, 7 }
 0x14f   : > { %s1404_s22 = scalar_lea.hbm %s2502_s13, %s1579_s17 }
 0x1b4   : > { %v624_v14 = vpop.permute.xlu1 %623  ;;  %v593_v15 = vpop.permute.xlu0 %592 }
 0x1b5   : > { %627 = vst.msk [vmem:[#allocation3 + $0x8] sm:$0xf] %vm586_vm2, %v624_v14  ;;  %595 = vst.msk [vmem:[#allocation3] sm:$0xf] %vm586_vm2, %v593_v15 }
 0x1b8   : > { %v609_v16 = vpop.permute.xlu0 %608  ;;  %v604_v17 = vpop.permute.xlu1 %603 }
 0x1b9   : > { %612 = vst.msk [vmem:[#allocation3 + $0x4] sm:$0xf] %vm586_vm2, %v609_v16  ;;  %607 = vst.msk [vmem:[#allocation2 + $0x4] sm:$0xf] %vm586_vm2, %v604_v17 }
 0x1bc   : > { %v639_v18 = vpop.permute.xlu0 %638  ;;  %v619_v19 = vpop.permute.xlu1 %618  ;;  %v652_v20 = vld [vmem:[#allocation3] sm:$0xf]  ;;  %v654_v25 = vld [vmem:[#allocation3 + $0x8] sm:$0xf] }
 0x1bd   : > { %642 = vst.msk [vmem:[#allocation3 + $0xc] sm:$0xf] %vm586_vm2, %v639_v18  ;;  %622 = vst.msk [vmem:[#allocation2 + $0x8] sm:$0xf] %vm586_vm2, %v619_v19  ;;  %v665_v21 = vsel %vm660_vm3, %v652_v20, 0  ;;  %v757_v27 = vsel %vm660_vm3, %v654_v25, 0 }
 0x1be   : > { %1626 = vmatpush3.bf16.xpose.msra.mxu1 %v665_v21 }
 0x1bf   : > { %1637 = vmatprep.subr.bf16.mxu1 %v2093_v0 }
 0x1c0   : > { %v634_v22 = vpop.permute.xlu0 %633  ;;  %v653_v23 = vld [vmem:[#allocation3 + $0x4] sm:$0xf]  ;;  %v649_v29 = vld [vmem:[#allocation2 + $0x4] sm:$0xf] }
 0x1c1   : > { %637 = vst.msk [vmem:[#allocation2 + $0xc] sm:$0xf] %vm586_vm2, %v634_v22  ;;  %v711_v24 = vsel %vm660_vm3, %v653_v23, 0 }
 0x1c2   : > { %1632 = vmatpush3.bf16.xpose.msra.mxu0 %v711_v24 }
 0x1c3   : > { %1643 = vmatprep.subr.bf16.mxu0 %v2093_v0 }
 0x1c4   : > { %v655_v28 = vld [vmem:[#allocation3 + $0xc] sm:$0xf]  ;;  %v650_v31 = vld [vmem:[#allocation2 + $0x8] sm:$0xf] }
 0x1c5   : > { %1628 = vmatmul.mubr.msk.bf16.vlgmr.msra.gmra.mxu1 %vm660_vm3, %v648_v26  ;;  %v803_v30 = vsel %vm660_vm3, %v655_v28, 0 }
 0x1c6   : > { %1638 = vmatpush3.bf16.xpose.msra.mxu1 %v757_v27  ;;  %1639 = vmatprep.mubr.msk.bf16.mxu1 %vm2094_vm0, %v2093_v0 }
 0x1c7   : > { %1649 = vmatprep.subr.bf16.mxu1 %v2093_v0 }
 0x1c8   : > { %v651_v32 = vld [vmem:[#allocation2 + $0xc] sm:$0xf] }
 0x1c9   : > { %1634 = vmatmul.mubr.msk.bf16.vlgmr.msra.gmra.mxu0 %vm660_vm3, %v649_v29 }
 0x1ca   : > { %1644 = vmatpush3.bf16.xpose.msra.mxu0 %v803_v30  ;;  %1645 = vmatprep.mubr.msk.bf16.mxu0 %vm2094_vm0, %v2093_v0 }
 0x1cb   : > { %1655 = vmatprep.subr.bf16.mxu0 %v2093_v0 }
 0x1cd   : > { %1640 = vmatmul.mubr.msk.bf16.vlgmr.msra.gmra.mxu1 %vm660_vm3, %v650_v31 }
 0x1ce   : > { %1651 = vmatprep.mubr.msk.bf16.mxu1 %vm2094_vm0, %v2093_v0 }
 0x1d1   : > { %1646 = vmatmul.mubr.msk.bf16.vlgmr.msra.gmra.mxu0 %vm660_vm3, %v651_v32 }
 0x1d2   : > { %1657 = vmatprep.mubr.msk.bf16.mxu0 %vm2094_vm0, %v2093_v0 }
 0x285   : > { %v701_v33 = vpop.f32.mrf.mxu1 }
 0x286   : > { %v845_v34 = vsel %vm660_vm3, %v701_v33, -inf }
 0x287   : > { %846 = vmax.xlane.f32.xlu1 %v845_v34  ;;  %v1629_v35 = vpop.f32.mrf.mxu1 }
 0x289   : > { %v704_v36 = vpop.f32.mrf.mxu1  ;;  %v747_v37 = vpop.f32.mrf.mxu0 }
 0x28a   : > { %v848_v38 = vsel %vm660_vm3, %v747_v37, -inf }
 0x28b   : > { %v1630_v39 = vpop.f32.mrf.mxu1  ;;  %849 = vmax.xlane.f32.xlu0 %v848_v38  ;;  %v1635_v40 = vpop.f32.mrf.mxu0 }
 0x28d   : > { %v750_v41 = vpop.f32.mrf.mxu0  ;;  %v793_v42 = vpop.f32.mrf.mxu1 }
 0x28e   : > { %v851_v43 = vsel %vm660_vm3, %v793_v42, -inf }
 0x28f   : > { %v1641_v44 = vpop.f32.mrf.mxu1  ;;  %852 = vmax.xlane.f32.xlu0 %v851_v43  ;;  %v1636_v45 = vpop.f32.mrf.mxu0 }
 0x290   : > { %v1822_v45 = vld [vmem:[%s2492_s3] sm:$0xff]  }
 0x291   : > { %v796_v46 = vpop.f32.mrf.mxu1  ;;  %v839_v47 = vpop.f32.mrf.mxu0 }
 0x292   : > { %v854_v48 = vsel %vm660_vm3, %v839_v47, -inf }
 0x293   : > { %v1642_v49 = vpop.f32.mrf.mxu1  ;;  %855 = vmax.xlane.f32.xlu1 %v854_v48  ;;  %v1647_v50 = vpop.f32.mrf.mxu0 }
 0x295   : > { %v842_v51 = vpop.f32.mrf.mxu0 }
 0x297   : > { %v1648_v52 = vpop.f32.mrf.mxu0 }
 0x2a4   : > { %613 = vrot.lane.b32.xlu1 %v2341_v10, %s2102_s20 }
 0x2a5   : > { %596 = vrot.lane.b32.xlu0 %v2341_v10, %s2103_s30 }
 0x310   : > { %v847_v53 = vpop.xlane.xlu1 %846 }
 0x311   : > { %v857_v54 = vsub.f32 %v701_v33, %v847_v53 }
 0x313   : > { %v861_v55 = vmul.f32 1.442695, %v857_v54 }
 0x314   : > { %v850_v56 = vpop.xlane.xlu0 %849 }
 0x315   : > { %1829 = vpow2.f32 %v861_v55  ;;  %v858_v57 = vsub.f32 %v747_v37, %v850_v56 }
 0x317   : > { %v863_v58 = vmul.f32 1.442695, %v858_v57 }
 0x318   : > { %v853_v59 = vpop.xlane.xlu0 %852 }
 0x319   : > { %1831 = vpow2.f32 %v863_v58  ;;  %v859_v60 = vsub.f32 %v793_v42, %v853_v59  ;;  %v1821_v42 = vld [vmem:[%s2492_s3 + $0x8] sm:$0xff]  }
 0x31b   : > { %v865_v61 = vmul.f32 1.442695, %v859_v60 }
 0x31c   : > { %v597_v62 = vpop.permute.xlu0 %596  ;;  %v856_v63 = vpop.xlane.xlu1 %855 }
 0x31d   : > { %1833 = vpow2.f32 %v865_v61  ;;  %599 = vst.msk [vmem:[#allocation4] sm:$0xf] %vm586_vm2, %v597_v62  ;;  %v860_v1 = vsub.f32 %v839_v47, %v856_v63 }
 0x31f   : > { %v867_v2 = vmul.f32 1.442695, %v860_v1 }
 0x320   : > { %v614_v4 = vpop.permute.xlu1 %613 }
 0x321   : > { %1835 = vpow2.f32 %v867_v2  ;;  %617 = vst.msk [vmem:[#allocation4 + $0x4] sm:$0xf] %vm586_vm2, %v614_v4  ;;  %v1560_v2 = vld [vmem:[#allocation9] ss:$0 sm:$0xff] }
 0x322   : > { %v1830_v5 = vpop.eup %1829 }
 0x323   : > { %v869_v6 = vsel %vm660_vm3, %v1830_v5, 0.0 }
 0x324   : > { %870 = vadd.xlane.f32.xlu0 %v869_v6  ;;  %v656_v7 = vld [vmem:[#allocation4] sm:$0xf] }
 0x325   : > { %v898_v8 = vsel %vm896_vm4, %v656_v7, 0 }
 0x326   : > { %v1832_v9 = vpop.eup %1831  ;;  %1650 = vmatpush3.bf16.msra.mxu1 %v898_v8 }
 0x327   : > { %v872_v11 = vsel %vm660_vm3, %v1832_v9, 0.0  ;;  %1661 = vmatprep.subr.bf16.mxu1 %v2093_v0 }
 0x328   : > { %873 = vadd.xlane.f32.xlu1 %v872_v11  ;;  %v657_v12 = vld [vmem:[#allocation4 + $0x4] sm:$0xf] }
 0x329   : > { %v944_v13 = vsel %vm896_vm4, %v657_v12, 0 }
 0x32a   : > { %v1834_v14 = vpop.eup %1833  ;;  %1656 = vmatpush3.bf16.msra.mxu0 %v944_v13 }
 0x32b   : > { %v875_v15 = vsel %vm660_vm3, %v1834_v14, 0.0  ;;  %1667 = vmatprep.subr.bf16.mxu0 %v2093_v0 }
 0x32c   : > { %876 = vadd.xlane.f32.xlu0 %v875_v15 }
 0x32e   : > { %v1836_v16 = vpop.eup %1835 }
 0x32f   : > { %v878_v17 = vsel %vm660_vm3, %v1836_v16, 0.0 }
 0x330   : > { %879 = vadd.xlane.f32.xlu1 %v878_v17  ;;  %v1823_v17 = vld [vmem:[#allocation14 + $0x8] sm:$0xff]  }
 0x341   : > { %628 = vrot.lane.b32.xlu1 %v2341_v10, %s2104_s23 }
 0x342   : > { %643 = vrot.lane.b32.xlu0 %v2341_v10, %s2105_s4 }
 0x3ad   : > { %v871_v18 = vpop.xlane.xlu0 %870 }
 0x3ae   : > { %1837 = vrcp.f32 %v871_v18  ;;  %v1824_v18 = vld [vmem:[#allocation14] sm:$0xff]  }
 0x3b1   : > { %v874_v19 = vpop.xlane.xlu1 %873 }
 0x3b2   : > { %1839 = vrcp.f32 %v874_v19 }
 0x3b5   : > { %v877_v20 = vpop.xlane.xlu0 %876 }
 0x3b6   : > { %1841 = vrcp.f32 %v877_v20 }
 0x3b9   : > { %v644_v21 = vpop.permute.xlu0 %643  ;;  %v880_v22 = vpop.xlane.xlu1 %879 }
 0x3ba   : > { %647 = vst.msk [vmem:[#allocation4 + $0xc] sm:$0xf] %vm586_vm2, %v644_v21  ;;  %1843 = vrcp.f32 %v880_v22  ;;  %v1564_v22 = vld [vmem:[#allocation11] ss:$0 sm:$0xff] }
 0x3bb   : > { %v1838_v23 = vpop.eup %1837 }
 0x3bc   : > { %v885_v24 = vmul.f32 %v1838_v23, %v1830_v5 }
 0x3bd   : > { %v629_v25 = vpop.permute.xlu1 %628 }
 0x3be   : > { %632 = vst.msk [vmem:[#allocation4 + $0x8] sm:$0xf] %vm586_vm2, %v629_v25  ;;  %v889_v26 = vpack.c.bf16 %v885_v24, %v885_v24  ;;  %v1565_v24 = vld [vmem:[#allocation12] ss:$0 sm:$0xff] }
 0x3bf   : > { %v1840_v27 = vpop.eup %1839 }
 0x3c0   : > { %1652 = vmatmul.mubr.msk.bf16.vlgmr.msra.gmra.mxu1 %vm660_vm3, %v889_v26  ;;  %v886_v10 = vmul.f32 %v1840_v27, %v1832_v9 }
 0x3c1   : > { %v659_v28 = vld [vmem:[#allocation4 + $0xc] sm:$0xf]  ;;  %1663 = vmatprep.mubr.msk.bf16.mxu1 %vm2094_vm0, %v2093_v0 }
 0x3c2   : > { %v890_v29 = vpack.c.bf16 %v886_v10, %v886_v10  ;;  %v1036_v30 = vsel %vm896_vm4, %v659_v28, 0  ;;  %v1825_v10 = vld [vmem:[%s2498_s9 + $0x18] sm:$0xff]   ;;  %v1826_v28 = vld [vmem:[%s2498_s9 + $0x10] sm:$0xff]  }
 0x3c3   : > { %v1842_v31 = vpop.eup %1841 }
 0x3c4   : > { %1658 = vmatmul.mubr.msk.bf16.vlgmr.msra.gmra.mxu0 %vm660_vm3, %v890_v29  ;;  %v887_v32 = vmul.f32 %v1842_v31, %v1834_v14  ;;  %v1827_v29 = vld [vmem:[%s2498_s9 + $0x8] sm:$0xff]  }
 0x3c5   : > { %1668 = vmatpush3.bf16.msra.mxu0 %v1036_v30  ;;  %v658_v33 = vld [vmem:[#allocation4 + $0x8] sm:$0xf]  ;;  %1669 = vmatprep.mubr.msk.bf16.mxu0 %vm2094_vm0, %v2093_v0  ;;  %v1828_v30 = vld [vmem:[%s2498_s9] sm:$0xff]   ;;  %v1566_v31 = vld [vmem:[#allocation15] ss:$0 sm:$0xff] }
 0x3c6   : > { %v990_v34 = vsel %vm896_vm4, %v658_v33, 0  ;;  %1681 = vmatprep.subr.bf16.mxu0 %v2093_v0  ;;  %v891_v36 = vpack.c.bf16 %v887_v32, %v887_v32 }
 0x3c7   : > { %v1844_v35 = vpop.eup %1843  ;;  %1662 = vmatpush3.bf16.msra.mxu1 %v990_v34 }
 0x3c8   : > { %v888_v37 = vmul.f32 %v1844_v35, %v1836_v16  ;;  %1673 = vmatprep.subr.bf16.mxu1 %v2093_v0 }
 0x3ca   : > { %1664 = vmatmul.mubr.msk.bf16.vlgmr.msra.gmra.mxu1 %vm660_vm3, %v891_v36  ;;  %v892_v38 = vpack.c.bf16 %v888_v37, %v888_v37 }
 0x3cb   : > { %1677 = vmatprep.mubr.msk.bf16.mxu1 %vm2094_vm0, %v2093_v0  ;;  %1674 = vmatpush3.bf16.msra.mxu1 %v1821_v42 }
 0x3cc   : > { %1670 = vmatmul.mubr.msk.bf16.vlgmr.msra.gmra.mxu0 %vm660_vm3, %v892_v38  ;;  %1675 = vmatprep.subr.bf16.mxu1 %v2093_v0 }
 0x3cd   : > { %1685 = vmatprep.mubr.msk.bf16.mxu0 %vm2094_vm0, %v2093_v0  ;;  %1682 = vmatpush3.bf16.msra.mxu0 %v1823_v17 }
 0x3ce   : > { %1683 = vmatprep.subr.bf16.mxu0 %v2093_v0 }
 0x3cf   : > { %1676 = vmatpush3.bf16.msra.mxu1 %v1822_v45 }
 0x3d0   : > { %1689 = vmatprep.subr.bf16.mxu1 %v2093_v0 }
 0x3d1   : > { %1684 = vmatpush3.bf16.msra.mxu0 %v1824_v18 }
 0x480   : > { %v934_v39 = vpop.f32.mrf.mxu1 }
 0x481   : > { %v1078_v40 = vpack.c.bf16 %v934_v39, %v934_v39 }
 0x482   : > { %v1653_v41 = vpop.f32.mrf.mxu1 }
 0x483   : > { %1079 = vst.msk [vmem:[#allocation5] sm:$0xf] %vm586_vm2, %v1078_v40 }
 0x484   : > { %v937_v43 = vpop.f32.mrf.mxu1  ;;  %v980_v44 = vpop.f32.mrf.mxu0 }
 0x485   : > { %v1584_v46 = vpack.c.bf16 %v980_v44, %v980_v44 }
 0x486   : > { %v1654_v47 = vpop.f32.mrf.mxu1  ;;  %v1659_v48 = vpop.f32.mrf.mxu0 }
 0x487   : > { %1084 = vrot.lane.b32.xlu1 %v1584_v46, %s2106_s27  ;;  %s1541_s27 = sshll.u32 %s507_s15, 3 }
 0x488   : > { %v983_v49 = vpop.f32.mrf.mxu0  ;;  %s509_s20 = scalar_lea.vmem [#allocation17], %s1541_s27 }
 0x489   : > { %s1406_s30 = sshll.u32 %s509_s20, 4  ;;  %s1407_s30 = int_to_ptr.vmem [resolvable:$true] %s1406_s30 }
 0x48a   : > { %v1660_v50 = vpop.f32.mrf.mxu0  ;;  %v1026_v51 = vpop.f32.mrf.mxu1  ;;  %s2007_s21 = scalar_lea.vmem %s1407_s30, 128 }
 0x48b   : > { %v1585_v52 = vpack.c.bf16 %v1026_v51, %v1026_v51  ;;  %p2008_p2 = scmp.ne.s32.totalorder %s1407_s30, %s2007_s21 }
 0x48c   : > { %v1665_v53 = vpop.f32.mrf.mxu1  ;;  %v1072_v54 = vpop.f32.mrf.mxu0 }
 0x48d   : > { %v1586_v55 = vpack.c.bf16 %v1072_v54, %v1072_v54  ;;  %1093 = vrot.lane.b32.xlu0 %v1585_v52, %s2107_s14  ;;  %p2009_p3 = pnand %p2008_p2, %p2532_p9  ;;  %s2109_s14 = smov [#allocation17]  }
 0x48e   : > { %v1029_v56 = vpop.f32.mrf.mxu1  ;;  %v1671_v57 = vpop.f32.mrf.mxu0 }
 0x48f   : > { %1102 = vrot.lane.b32.xlu1 %v1586_v55, %s2108_s16  ;;  %p2010_p5 = pneg %p2009_p3  ;;  %s2011_s16 = sshll.u32 %s2109_s14, 4  ;;  %s2012_s16 = int_to_ptr.vmem [resolvable:$false] %s2011_s16 }
 0x490   : > { %v1666_v58 = vpop.f32.mrf.mxu1  ;;  %v1075_v59 = vpop.f32.mrf.mxu0  ;;  %s2013_s29 = scalar_lea.vmem %s2012_s16, 256  ;;  %p2014_p6 = scmp.lt.s32.totalorder %s1407_s30, %s2012_s16 }
 0x491   : > { %v1576_v59 = vld [vmem:[%s2500_s11] ss:$0 sm:$0xff]  ;;  %p2015_p10 = scmp.lt.s32.totalorder %s2013_s29, %s2007_s21 }
 0x492   : > { %v1672_v60 = vpop.f32.mrf.mxu0 }
 0x493   : > { %p2016_p13 = por %p2015_p10, %p2014_p6 }
 0x495   : > { %p2017_p4 = pnand %p2016_p13, %p2010_p5 }
 0x4f9   : > { %v1085_v61 = vpop.permute.xlu1 %1084 }
 0x4fa   : > { %1088 = vst.msk [vmem:[#allocation5] sm:$0xf] %vm1087_vm5, %v1085_v61  ;;  %v1577_v61 = vld [vmem:[%s2501_s12] ss:$0 sm:$0xff] }
 0x4ff   : > { %v1094_v62 = vpop.permute.xlu0 %1093 }
 0x500   : > { %1097 = vst.msk [vmem:[#allocation5] sm:$0xf] %vm1096_vm6, %v1094_v62 }
 0x501   : > { %v1103_v63 = vpop.permute.xlu1 %1102 }
 0x502   : > { %1106 = vst.msk [vmem:[#allocation5] sm:$0xf] %vm1105_vm7, %v1103_v63 }
 0x509   : > { %v1107_v1 = vld [vmem:[#allocation5] sm:$0xf] }
 0x50a   : > { %1678 = vmatmul.mubr.msk.bf16.vlgmr.msra.gmra.mxu1 %vm540_vm1, %v1107_v1 }
 0x50b   : > { %1697 = vmatprep.mubr.msk.bf16.mxu1 %vm2094_vm0, %v2093_v0  ;;  %1690 = vmatpush3.bf16.msra.mxu1 %v1825_v10 }
 0x50c   : > { %1691 = vmatprep.subr.bf16.mxu1 %v2093_v0 }
 0x50f   : > { %1692 = vmatpush3.bf16.msra.mxu1 %v1826_v28 }
 0x510   : > { %1693 = vmatprep.subr.bf16.mxu1 %v2093_v0 }
 0x513   : > { %1694 = vmatpush3.bf16.msra.mxu1 %v1827_v29 }
 0x514   : > { %1695 = vmatprep.subr.bf16.mxu1 %v2093_v0  ;;  %v1570_v0 = vld [vmem:[%s2499_s10] ss:$0 sm:$0xff] }
 0x517   : > { %1696 = vmatpush3.bf16.msra.mxu1 %v1828_v30 }
 0x5ca   : > { %v1168_v4 = vpop.f32.mrf.mxu1 }
 0x5cb   : > { %v1169_v5 = vadd.f32 %v1560_v2, %v1168_v4 }
 0x5cc   : > { %v1679_v6 = vpop.f32.mrf.mxu1 }
 0x5cd   : > { %v1174_v7 = vadd.f32 %v1169_v5, %v2332_v3 }
 0x5ce   : > { %v1171_v8 = vpop.f32.mrf.mxu1 }
 0x5cf   : > { %v1177_v9 = vsel %vm540_vm1, %v1174_v7, 0.0 }
 0x5d0   : > { %1178 = vadd.xlane.f32.xlu0 %v1177_v9  ;;  %v1680_v11 = vpop.f32.mrf.mxu1 }
 0x659   : > { %v1179_v12 = vpop.xlane.xlu0 %1178 }
 0x65a   : > { %v1181_v13 = vmul.f32 0.03125, %v1179_v12 }
 0x65c   : > { %v1182_v14 = vsub.f32 %v1174_v7, %v1181_v13 }
 0x65e   : > { %v1183_v15 = vmul.f32 %v1182_v14, %v1182_v14 }
 0x660   : > { %v1184_v16 = vsel %vm540_vm1, %v1183_v15, 0.0 }
 0x661   : > { %1185 = vadd.xlane.f32.xlu1 %v1184_v16 }
 0x6ea   : > { %v1186_v19 = vpop.xlane.xlu1 %1185 }
 0x6eb   : > { %v1187_v3 = vmul.f32 0.03125, %v1186_v19 }
 0x6ed   : > { %v1188_v20 = vadd.f32 1e-05, %v1187_v3 }
 0x6ef   : > { %1845 = vrsqrt.f32 %v1188_v20 }
 0x6fc   : > { %v1846_v21 = vpop.eup %1845 }
 0x6fd   : > { %v1190_v23 = vmul.f32 %v1846_v21, %v1182_v14 }
 0x6ff   : > { %v1197_v25 = vmul.f32 %v1564_v22, %v1190_v23 }
 0x701   : > { %v1204_v26 = vadd.f32 %v1565_v24, %v1197_v25 }
 0x703   : > { %v1205_v27 = vpack.c.bf16 %v1204_v26, %v1204_v26 }
 0x705   : > { %1686 = vmatmul.mubr.msk.bf16.vlgmr.msra.gmra.mxu0 %vm540_vm1, %v1205_v27 }
 0x7c5   : > { %v1266_v32 = vpop.f32.mrf.mxu0 }
 0x7c6   : > { %v1267_v33 = vadd.f32 %v1566_v31, %v1266_v32 }
 0x7c7   : > { %v1687_v34 = vpop.f32.mrf.mxu0 }
 0x7c8   : > { %v1273_v35 = vmul.f32 0.70710677, %v1267_v33  ;;  %v1272_v39 = vmul.f32 0.5, %v1267_v33 }
 0x7c9   : > { %v1269_v36 = vpop.f32.mrf.mxu0 }
 0x7ca   : > { %1847 = verf.f32 %v1273_v35 }
 0x7cb   : > { %v1688_v37 = vpop.f32.mrf.mxu0 }
 0x7d7   : > { %v1848_v38 = vpop.eup %1847 }
 0x7d8   : > { %v1275_v40 = vadd.f32 1.0, %v1848_v38 }
 0x7da   : > { %v1276_v41 = vmul.f32 %v1275_v40, %v1272_v39 }
 0x7dc   : > { %v1277_v42 = vpack.c.bf16 %v1276_v41, %v1276_v41 }
 0x7de   : > { %1698 = vmatmul.mubr.msk.bf16.vlgmr.msra.gmra.mxu1 %vm1317_vm8, %v1277_v42 }
 0x89e   : > { %v1355_v43 = vpop.f32.mrf.mxu1 }
 0x89f   : > { %v1356_v44 = vadd.f32 %v1570_v0, %v1355_v43 }
 0x8a0   : > { %v1699_v45 = vpop.f32.mrf.mxu1 }
 0x8a1   : > { %v1361_v46 = vadd.f32 %v1356_v44, %v1204_v26 }
 0x8a2   : > { %v1358_v47 = vpop.f32.mrf.mxu1 }
 0x8a3   : > { %v1364_v48 = vsel %vm540_vm1, %v1361_v46, 0.0 }
 0x8a4   : > { %1365 = vadd.xlane.f32.xlu0 %v1364_v48  ;;  %v1700_v49 = vpop.f32.mrf.mxu1 }
 0x92d   : > { %v1366_v50 = vpop.xlane.xlu0 %1365 }
 0x92e   : > { %v1367_v51 = vmul.f32 0.03125, %v1366_v50 }
 0x930   : > { %v1368_v52 = vsub.f32 %v1361_v46, %v1367_v51 }
 0x932   : > { %v1369_v53 = vmul.f32 %v1368_v52, %v1368_v52 }
 0x934   : > { %v1370_v54 = vsel %vm540_vm1, %v1369_v53, 0.0 }
 0x935   : > { %1371 = vadd.xlane.f32.xlu0 %v1370_v54 }
 0x9be   : > { %v1372_v55 = vpop.xlane.xlu0 %1371 }
 0x9bf   : > { %v1373_v56 = vmul.f32 0.03125, %v1372_v55 }
 0x9c1   : > { %v1374_v57 = vadd.f32 1e-05, %v1373_v56 }
 0x9c3   : > { %1849 = vrsqrt.f32 %v1374_v57 }
 0x9d0   : > { %v1850_v58 = vpop.eup %1849 }
 0x9d1   : > { %v1376_v60 = vmul.f32 %v1850_v58, %v1368_v52 }
 0x9d3   : > { %v1383_v62 = vmul.f32 %v1576_v59, %v1376_v60 }
 0x9d5   : > { %v1390_v63 = vadd.f32 %v1577_v61, %v1383_v62 }
 0x9d7   : > { %1391 = vst.msk [vmem:[%s509_s20] sm:$0xff] %vm540_vm1, %v1390_v63 }
 0x9d8   : > { %2020 = shalt.err (!%p2017_p4)
}
 0x9d9   : > { %s2021_s27 = scalar_lea.hbm %s1404_s22, 128  ;;  %s2025_s2 = scalar_lea.hbm %s2502_s13, 256 }
 0x9da   : > { %p2022_p7 = scmp.ne.s32.totalorder %s1404_s22, %s2021_s27  ;;  %p2026_p11 = scmp.lt.s32.totalorder %s1404_s22, %s2502_s13 }
 0x9db   : > { %p2027_p0 = scmp.lt.s32.totalorder %s2025_s2, %s2021_s27 }
 0x9dc   : > { %p2023_p8 = pnand %p2022_p7, %p2532_p9 }
 0x9dd   : > { %p2028_p1 = por %p2027_p0, %p2026_p11 }
 0x9de   : > { %p2024_p12 = pneg %p2023_p8 }
 0x9e0   : > { %p2029_p2 = pnand %p2028_p1, %p2024_p12 }
 0x9e2   : > { %2032 = shalt.err (!%p2029_p2)
}
 0x9e3   : > { %1725 = dma.vmem_to_hbm [thread:$0]  (%p2532_p9), %s1407_s30, 128, %s1404_s22, %s1393_s24  }
 0x9e4 PF: > { %s2533_s23 = sld [smem:[#allocation26_spill]]  ;;  %p1762_p3 = scmp.ge.s32.totalorder %s2083_s28, 2 }
 0x9e5   : > { %s1418_s4 = sand.u32 1, %s2071_s25  }
 0x9e6   : > { %s1419_s21 = scalar_lea.sflag [#allocation8], %s1418_s4 }
 0x9ea   : > { %p2534_p5 = scmp.ne.s32.totalorder %s2533_s23, 0 }
 0x9ec   : > { %p1747_p6 = pnand %p1762_p3, %p2534_p5 }
 0x9ee   : > { %p1748_p10 = pneg %p1747_p6 }
 0x9f0   : > { %2066 = dma.done.wait (%p1748_p10), %s1419_s21, 128  }
 0x9f1   : > { %2068 = vsyncadd (%p1748_p10), %s1419_s21, 4294967168  ;;  %s2535_s28 = sld [smem:[#allocation24_spill]]  ;;  %s2538_s25 = smov %s2075_s26 }
 0x9f2   : > { %s2536_s14 = sld [smem:[#allocation23_spill]] }
 0x9f3   : > { %s2537_s27 = sld [smem:[#allocation25_spill]] }
 0x9f7   : > { %p27_p13 = scmp.ge.s32.totalorder %s2535_s28, 4  }
 0x9f8   : > { %s2539_s26 = smov %s2536_s14 }
 0x9f9   :  { %29 = sbr.rel (!%p27_p13) target bundleno = 10 (0xa), region = 141 }
 0x9fe   :  { %1424 = vsyncpa [#allocation7], 1 }
 0x9ff   :  { %1426 = vsyncpa [#allocation7 + $0x1], 1 }
 0xa00   :  { %1427 = vsyncpa [#allocation10], 1 }
 0xa01   :  { %1428 = vsyncpa [#allocation13], 1 }
 0xa02   :  { %1429 = vsyncpa [#allocation16], 1 }
 0xa03   :  { %1430 = vsyncpa [#allocation8], 1 }
 0xa04   :  { %1432 = vsyncpa [#allocation8 + $0x1], 1 }

</bundles_post_ra>
